<compile_context>
chip_gen: v6e
topology: v6e:2x2x1
jax: 0.10.0
libtpu: 0.0.40
codegen_flags: <defaults>
</compile_context>

<pallas_src>
import functools
import math

import jax
import jax.numpy as jnp
from jax import lax
from jax.experimental import pallas as pl
from jax.experimental.pallas import tpu as pltpu


def _round_up(v, mult):
    return ((v + mult - 1) // mult) * mult


def _arcface_kernel(xn_ref, wn_ref, label_ref, out_ref, *,
                    s, cos_m, sin_m, th, mm, easy_margin, tn):
    j = pl.program_id(1)                       # class-tile index

    # cosine = normalized-x @ normalized-w^T.  Contraction is on the trailing
    # dim of both operands so the (tn, D) weight tile is consumed in its
    # natural layout (no transpose / relayout).
    cosine = lax.dot_general(xn_ref[...], wn_ref[...],
                             (((1,), (1,)), ((), ())),
                             preferred_element_type=jnp.float32)   # (tm, tn) f32

    # Margin epilogue in f32 (v5e has no bf16 VPU/EUP path).  The clamp guards
    # against |cosine| drifting slightly past 1 with bf16 MXU operands.
    sine = jnp.sqrt(jnp.maximum(1.0 - cosine * cosine, 0.0))
    phi = cosine * cos_m - sine * sin_m
    if easy_margin:
        phi = jnp.where(cosine > 0.0, phi, cosine)
    else:
        phi = jnp.where(cosine > th, phi, cosine - mm)

    # Fused one-hot blend: single compare+select.  The class-tile base offset
    # is folded into the narrow (tm, 1) label column, not the (tm, tn) iota.
    label_local = label_ref[...] - j * tn                       # (tm, 1) int32
    col_ids = lax.broadcasted_iota(jnp.int32, cosine.shape, 1)  # (tm, tn)
    out_ref[...] = (jnp.where(col_ids == label_local, phi, cosine) * s
                    ).astype(out_ref.dtype)


def arcface_forward(x, weight, label, *, s=64.0, m=0.5, easy_margin=False,
                    tm=512, tn=1024, mxu_dtype=jnp.bfloat16,
                    out_dtype=jnp.float32):
    """x: (B, in_features), weight: (out_features, in_features), label: (B,) int.
       Returns (B, out_features) ArcFace logits in `out_dtype`."""
    B, D = x.shape
    C, D2 = weight.shape
    assert D == D2, "in_features mismatch"

    # Hoisted normalization (exactly F.normalize semantics, eps=1e-12), done
    # once in f32 in the wrapper, then cast to the MXU dtype.
    eps = 1e-12
    x32 = x.astype(jnp.float32)
    w32 = weight.astype(jnp.float32)
    xn = x32 / jnp.maximum(jnp.linalg.norm(x32, axis=-1, keepdims=True), eps)
    wn = w32 / jnp.maximum(jnp.linalg.norm(w32, axis=-1, keepdims=True), eps)
    xn = xn.astype(mxu_dtype)
    wn = wn.astype(mxu_dtype)

    # Tile clamping: sublane multiples of 8 for the batch tile, lane multiples
    # of 128 for the class tile (lane-dense, unmasked output stores).
    tm = max(8, min(_round_up(tm, 8), _round_up(B, 8)))
    cp128 = _round_up(C, 128)
    tn = max(128, min(_round_up(tn, 128), cp128))
    # Keep >=2 class tiles when possible so the "parallel" class axis can feed
    # both TensorCores on v7x even if the batch axis collapses to one tile.
    if tn >= cp128 and cp128 >= 256:
        tn = _round_up(cp128 // 2, 128)
    Bp = _round_up(B, tm)
    Cp = _round_up(C, tn)

    label2d = label.reshape(B, 1).astype(jnp.int32)
    if Bp != B:
        xn = jnp.pad(xn, ((0, Bp - B), (0, 0)))
        label2d = jnp.pad(label2d, ((0, Bp - B), (0, 0)), constant_values=-1)
    if Cp != C:
        wn = jnp.pad(wn, ((0, Cp - C), (0, 0)))

    grid = (Bp // tm, Cp // tn)

    kernel = functools.partial(
        _arcface_kernel,
        s=float(s),
        cos_m=math.cos(m),
        sin_m=math.sin(m),
        th=math.cos(math.pi - m),
        mm=math.sin(math.pi - m) * m,
        easy_margin=bool(easy_margin),
        tn=tn)

    # Explicit VMEM budget: double-buffered x / w / label inputs + output tile,
    # with 2x headroom, capped at 48 MiB (leaves scratch room on v7x's 64 MiB).
    itm = jnp.dtype(mxu_dtype).itemsize
    ito = jnp.dtype(out_dtype).itemsize
    est = 2 * (tm * D * itm + tn * D * itm + tm * 4 + tm * tn * ito)
    vmem_limit = int(min(max(2 * est, 16 * 1024 * 1024), 48 * 1024 * 1024))

    out = pl.pallas_call(
        kernel,
        out_shape=jax.ShapeDtypeStruct((Bp, Cp), out_dtype),
        grid=grid,
        in_specs=[
            pl.BlockSpec((tm, D), lambda i, j: (i, 0)),   # x: resident across class tiles
            pl.BlockSpec((tn, D), lambda i, j: (j, 0)),   # weight: streams over class tiles
            pl.BlockSpec((tm, 1), lambda i, j: (i, 0)),   # label column
        ],
        out_specs=pl.BlockSpec((tm, tn), lambda i, j: (i, j)),
        compiler_params=pltpu.CompilerParams(
            dimension_semantics=("parallel", "parallel"),
            vmem_limit_bytes=vmem_limit),
    )(xn, wn, label2d)

    if Bp != B or Cp != C:
        out = out[:B, :C]
    return out


def _reference(x, weight, label, *, s=64.0, m=0.5, easy_margin=False):
    """Pure-JAX reference mirroring the PyTorch forward (device_id=None path)."""
    eps = 1e-12
    xn = x / jnp.maximum(jnp.linalg.norm(x, axis=-1, keepdims=True), eps)
    wn = weight / jnp.maximum(jnp.linalg.norm(weight, axis=-1, keepdims=True), eps)
    cosine = jnp.dot(xn, wn.T, precision=lax.Precision.HIGHEST)
    sine = jnp.sqrt(jnp.maximum(1.0 - cosine ** 2, 0.0))
    phi = cosine * math.cos(m) - sine * math.sin(m)
    if easy_margin:
        phi = jnp.where(cosine > 0, phi, cosine)
    else:
        phi = jnp.where(cosine > math.cos(math.pi - m), phi,
                        cosine - math.sin(math.pi - m) * m)
    one_hot = jax.nn.one_hot(label, cosine.shape[1], dtype=cosine.dtype)
    return (one_hot * phi + (1.0 - one_hot) * cosine) * s


# TODO(synk): the device_id != None multi-GPU model-parallel chunking branch of
# the PyTorch module is not translated; it produces the same logits as the
# single-device path, which is what this kernel implements.

if __name__ == "__main__":
    # Small shapes consistent with an ArcFace head: batch=256, in_features=128,
    # out_features=512 classes.
    B, IN_F, OUT_F = 256, 128, 512

    key = jax.random.PRNGKey(0)
    k_x, k_w, k_l = jax.random.split(key, 3)
    x = jax.random.normal(k_x, (B, IN_F), dtype=jnp.float32)
    bound = math.sqrt(6.0 / (IN_F + OUT_F))                 # xavier_uniform_
    weight = jax.random.uniform(k_w, (OUT_F, IN_F), jnp.float32, -bound, bound)
    label = jax.random.randint(k_l, (B,), 0, OUT_F, dtype=jnp.int32)

    ref = _reference(x, weight, label, s=64.0, m=0.5, easy_margin=False)

    # Exact-semantics check: f32 MXU operands on an explicit 2x2 tile grid
    # (exercises the class-tile label offset and the pinned-x / streaming-w path).
    out_f32 = jax.block_until_ready(
        arcface_forward(x, weight, label, tm=128, tn=256, mxu_dtype=jnp.float32))
    assert out_f32.shape == (B, OUT_F)
    assert jnp.allclose(out_f32, ref, atol=1e-2, rtol=1e-3), "f32 mismatch vs reference"

    # Default fast path: bf16 MXU operands, f32 accumulate/epilogue, auto tiles.
    out_bf = jax.block_until_ready(arcface_forward(x, weight, label))
    assert out_bf.shape == (B, OUT_F)
    assert jnp.allclose(out_bf, ref, atol=1.0), "bf16-operand mismatch vs reference"

    # bf16 output writeback path (halves output HBM bytes).
    out_bf_o = jax.block_until_ready(
        arcface_forward(x, weight, label, out_dtype=jnp.bfloat16))
    assert out_bf_o.dtype == jnp.bfloat16
    assert jnp.allclose(out_bf_o.astype(jnp.float32), ref, atol=1.5), \
        "bf16-output mismatch vs reference"

    # Unaligned shapes: exercises batch/class padding and output slice-back.
    B2, C2 = 100, 300
    x2 = jax.random.normal(jax.random.PRNGKey(1), (B2, IN_F), dtype=jnp.float32)
    w2 = jax.random.uniform(jax.random.PRNGKey(2), (C2, IN_F), jnp.float32, -bound, bound)
    l2 = jax.random.randint(jax.random.PRNGKey(3), (B2,), 0, C2, dtype=jnp.int32)
    out2 = jax.block_until_ready(
        arcface_forward(x2, w2, l2, tm=128, tn=256, mxu_dtype=jnp.float32))
    ref2 = _reference(x2, w2, l2)
    assert out2.shape == (B2, C2)
    assert jnp.allclose(out2, ref2, atol=1e-2, rtol=1e-3), "padded-case mismatch"

    # easy_margin branch.
    out3 = jax.block_until_ready(
        arcface_forward(x, weight, label, easy_margin=True, mxu_dtype=jnp.float32,
                        tm=128, tn=256))
    ref3 = _reference(x, weight, label, easy_margin=True)
    assert jnp.allclose(out3, ref3, atol=1e-2, rtol=1e-3), "easy_margin mismatch"

    print("KERNEL_OK")
</pallas_src>

<mosaic_0001>
module attributes {stable_mosaic.version = 11 : i64} {
  func.func @_arcface_kernel(%arg0: i32, %arg1: i32, %arg2: memref<128x128xf32, #tpu.memory_space<vmem>>, %arg3: memref<256x128xf32, #tpu.memory_space<vmem>>, %arg4: memref<128x1xi32, #tpu.memory_space<vmem>>, %arg5: memref<128x256xf32, #tpu.memory_space<vmem>>) attributes {dimension_semantics = [#tpu.dimension_semantics<parallel>, #tpu.dimension_semantics<parallel>], iteration_bounds = array<i64: 2, 2>, scalar_prefetch = 0 : i64, scratch_operands = 0 : i64, tpu.core_type = #tpu.core_type<tc>, window_params = [{transform_indices = @transform_0, window_bounds = array<i64: 128, 128>}, {transform_indices = @transform_1, window_bounds = array<i64: 256, 128>}, {transform_indices = @transform_2, window_bounds = array<i64: 128, 1>}, {transform_indices = @transform_3, window_bounds = array<i64: 128, 256>}]} {
    %c0 = arith.constant 0 : index
    %c0_0 = arith.constant 0 : index
    %0 = vector.load %arg2[%c0, %c0_0] : memref<128x128xf32, #tpu.memory_space<vmem>>, vector<128x128xf32>
    %c0_1 = arith.constant 0 : index
    %c0_2 = arith.constant 0 : index
    %1 = vector.load %arg3[%c0_1, %c0_2] : memref<256x128xf32, #tpu.memory_space<vmem>>, vector<256x128xf32>
    %cst = arith.constant dense<0.000000e+00> : vector<128x256xf32>
    %2 = tpu.matmul %0, %1, %cst {dimension_numbers = #tpu.dot_dimension_numbers<[1], [1], [0], [0], [0, 0, 1, 0], [], []>} : vector<128x128xf32>, vector<256x128xf32>, vector<128x256xf32> -> vector<128x256xf32>
    %3 = arith.mulf %2, %2 : vector<128x256xf32>
    %cst_3 = arith.constant 1.000000e+00 : f32
    %4 = vector.broadcast %cst_3 : f32 to vector<128x256xf32>
    %5 = arith.subf %4, %3 : vector<128x256xf32>
    %cst_4 = arith.constant 0.000000e+00 : f32
    %6 = vector.broadcast %cst_4 : f32 to vector<128x256xf32>
    %7 = arith.maximumf %5, %6 : vector<128x256xf32>
    %8 = math.sqrt %7 : vector<128x256xf32>
    %cst_5 = arith.constant 0.87758255 : f32
    %9 = vector.broadcast %cst_5 : f32 to vector<128x256xf32>
    %10 = arith.mulf %2, %9 : vector<128x256xf32>
    %cst_6 = arith.constant 0.47942555 : f32
    %11 = vector.broadcast %cst_6 : f32 to vector<128x256xf32>
    %12 = arith.mulf %8, %11 : vector<128x256xf32>
    %13 = arith.subf %10, %12 : vector<128x256xf32>
    %cst_7 = arith.constant -0.87758255 : f32
    %14 = vector.broadcast %cst_7 : f32 to vector<128x256xf32>
    %15 = arith.cmpf ogt, %2, %14 : vector<128x256xf32>
    %cst_8 = arith.constant 0.239712775 : f32
    %16 = vector.broadcast %cst_8 : f32 to vector<128x256xf32>
    %17 = arith.subf %2, %16 : vector<128x256xf32>
    %18 = arith.select %15, %13, %17 : vector<128x256xi1>, vector<128x256xf32>
    %c0_9 = arith.constant 0 : index
    %c0_10 = arith.constant 0 : index
    %19 = vector.load %arg4[%c0_9, %c0_10] : memref<128x1xi32, #tpu.memory_space<vmem>>, vector<128x1xi32>
    %c256_i32 = arith.constant 256 : i32
    %20 = arith.muli %arg1, %c256_i32 : i32
    %21 = vector.broadcast %20 : i32 to vector<128x1xi32>
    %22 = arith.subi %19, %21 : vector<128x1xi32>
    %23 = tpu.iota {dimensions = array<i32: 1>} : vector<128x256xi32>
    %24 = vector.broadcast %22 : vector<128x1xi32> to vector<128x256xi32>
    %25 = arith.cmpi eq, %23, %24 : vector<128x256xi32>
    %26 = arith.select %25, %18, %2 : vector<128x256xi1>, vector<128x256xf32>
    %cst_11 = arith.constant 6.400000e+01 : f32
    %27 = vector.broadcast %cst_11 : f32 to vector<128x256xf32>
    %28 = arith.mulf %26, %27 : vector<128x256xf32>
    %c0_12 = arith.constant 0 : index
    %c0_13 = arith.constant 0 : index
    %29 = vector.load %arg5[%c0_12, %c0_13] : memref<128x256xf32, #tpu.memory_space<vmem>>, vector<128x256xf32>
    tpu.vector_store %arg5[%c0_12, %c0_13], %28 {strides = array<i32>} : memref<128x256xf32, #tpu.memory_space<vmem>>, vector<128x256xf32>,
    return
  }
  func.func @transform_0(%arg0: i32, %arg1: i32) -> (i32, i32) {
    %c0_i32 = arith.constant 0 : i32
    %c0_i32_0 = arith.constant 0 : i32
    return %arg0, %c0_i32 : i32, i32
  }
  func.func @transform_1(%arg0: i32, %arg1: i32) -> (i32, i32) {
    %c0_i32 = arith.constant 0 : i32
    %c0_i32_0 = arith.constant 0 : i32
    return %arg1, %c0_i32 : i32, i32
  }
  func.func @transform_2(%arg0: i32, %arg1: i32) -> (i32, i32) {
    %c0_i32 = arith.constant 0 : i32
    %c0_i32_0 = arith.constant 0 : i32
    return %arg0, %c0_i32 : i32, i32
  }
  func.func @transform_3(%arg0: i32, %arg1: i32) -> (i32, i32) {
    %c0_i32 = arith.constant 0 : i32
    return %arg0, %arg1 : i32, i32
  }
}

</mosaic_0001>

<bundles_post_ra>
// kernel: tpu_custom_call.1
= control target key start
LH: loop header
LB: loop body
LE: loop exit
PB: predicated region body
PF: predicated region fallthrough
CT: control target
= control target key end

     0   :  { %8 = vsyncpa [#allocation3], 0  ;;  %s3004_s0 = inlined_call_operand.vmem [shape: f32[256,128], index: 0, kind: input, shape index: {}]   ;;  %s3005_s1 = inlined_call_operand.hbm [shape: f32[512,128], index: 1, kind: input, shape index: {}]   ;;  %s3006_s2 = inlined_call_operand.vmem [shape: s32[256,1], index: 2, kind: input, shape index: {}]   ;;  %s3007_s3 = inlined_call_operand.hbm [shape: f32[256,512], index: 3, kind: output, shape index: {}]  }
   0x1   :  { %10 = vsyncpa [#allocation3 + $0x1], 0 }
   0x2   :  { %11 = vsyncpa [#allocation4], 0 }
   0x3   :  { %13 = vsyncpa [#allocation4 + $0x1], 0  ;;  %s1816_s12 = smov 0   ;;  %s1818_s13 = smov 0  }
   0x4   :  { %s1820_s14 = smov 0   ;;  %s1822_s15 = smov 0  }
   0x5   :  { %s1824_s16 = smov 0   ;;  %s1826_s17 = smov 0  }
   0x6   :  { %s1828_s18 = smov 0   ;;  %s1830_s19 = smov 0  }
   0x7   :  { %s1832_s20 = smov 0   ;;  %s1834_s21 = smov 0  }
   0x8   :  { %s1836_s22 = smov 0  }
   0x9 LB: > { %3011 = sst [smem:[#allocation8_spill]] %s1782_s21  ;;  %s1312_s23 = sadd.s32 4294967295, %s1786_s22   ;;  %s1786_s22 = sphi %s1836_s22, %s19_s22   ;;  %s1782_s21 = sphi %s1834_s21, %s3021_s21   ;;  %s1778_s20 = sphi %s1832_s20, %s3029_s20   ;;  %s1774_s19 = sphi %s1830_s19, %s3019_s19   ;;  %s1770_s18 = sphi %s1828_s18, %s3028_s18   ;;  %s1766_s17 = sphi %s1826_s17, %s3027_s17   ;;  %s1762_s16 = sphi %s1824_s16, %s3026_s16   ;;  %s1758_s15 = sphi %s1822_s15, %s3025_s15   ;;  %s1754_s14 = sphi %s1820_s14, %s3024_s14   ;;  %s1750_s13 = sphi %s1818_s13, %s3023_s13   ;;  %s1746_s12 = sphi %s1816_s12, %s3022_s12  }
   0xa   : > { %s1313_s24 = sadd.s32 4294967294, %s1786_s22   ;;  %s28_s25 = sadd.s32 1, %s1778_s20 }
   0xb   : > { %s31_s26 = sadd.s32 1, %s1782_s21  ;;  %p29_p0 = scmp.ge.s32.totalorder %s28_s25, 2 }
   0xc   : > { %s64_s27 = sadd.s32 1, %s1766_s17  ;;  %p71_p1 = scmp.ne.s32.totalorder %s1766_s17, %s1762_s16 }
   0xd   : > { %p72_p2 = scmp.eq.s32.totalorder %s1786_s22, 0  ;;  %s3031_s25 = smov (%p29_p0, %s28_s25), 0 }
   0xe   : > { %3012 = sst [smem:[#allocation9_spill]] %s3031_s25  ;;  %s3033_s26 = smov (!%p29_p0, %s31_s26), %s1782_s21 }
   0xf   : > { %s61_s28 = ssub.s32 %s1778_s20, %s3031_s25  ;;  %p1882_p3 = por %p72_p2, %p71_p1 }
  0x10   : > { %p33_p4 = scmp.ge.s32.totalorder %s3033_s26, 2  ;;  %p62_p5 = scmp.eq.s32.totalorder %s61_s28, 0 }
  0x11   : > { %p77_p6 = scmp.ne.s32.totalorder %s1762_s16, %s1758_s15  ;;  %p78_p7 = scmp.eq.s32.totalorder %s1312_s23, 0 }
  0x12   : > { %s3035_s26 = smov (%p33_p4, %s3033_s26), 0  ;;  %s118_s7 = sadd.s32 1, %s1754_s14 }
  0x13   : > { %3014 = sst [smem:[#allocation10_spill]] %s3035_s26  ;;  %p1892_p8 = por %p78_p7, %p77_p6 }
  0x14   : > { %s1890_s30 = scalar_select %p62_p5, %s1766_s17, %s64_s27  }
  0x15   : > { %s113_s5 = ssub.s32 %s1782_s21, %s3035_s26  ;;  %p128_p10 = scmp.ne.s32.totalorder %s1754_s14, %s1750_s13 }
  0x16   : > { %s115_s6 = sor.u32 %s113_s5, %s61_s28  ;;  %p129_p11 = scmp.eq.s32.totalorder %s1312_s23, 3 }
  0x17   : > { %p116_p9 = scmp.eq.s32.totalorder %s115_s6, 0  ;;  %p134_p12 = scmp.ne.s32.totalorder %s1750_s13, %s1746_s12 }
  0x18   : > { %p1906_p13 = por %p129_p11, %p128_p10  ;;  %p135_p0 = scmp.eq.s32.totalorder %s1313_s24, 3 }
  0x19   : > { %s1904_s8 = scalar_select %p116_p9, %s1754_s14, %s118_s7  }
  0x1a   : > { %p1476_p1 = scmp.lt.s32.totalorder %s1786_s22, 4  ;;  %p1911_p2 = por %p135_p0, %p134_p12 }
  0x1b   : > { %s164_s11 = sand.u32 1, %s1766_s17   ;;  %s1366_s27 = sshll.u32 %s1778_s20, 12 }
  0x1c   : > { %s1316_s15 = sshll.u32 %s164_s11, 8  ;;  %s174_s23 = scalar_lea.hbm %s3005_s1, %s1366_s27 }
  0x1d   : > { %s168_s6 = scalar_lea.vmem [#allocation2], %s1316_s15  ;;  %p1922_p4 = pnand %p1476_p1, %p1882_p3 }
  0x1e   : > { %s175_s7 = sshll.u32 %s168_s6, 4  ;;  %p1319_p5 = scmp.ge.s32.totalorder %s1786_s22, 1  ;;  %s176_s7 = int_to_ptr.vmem [resolvable:$true] %s175_s7 }
  0x1f   : > { %s165_s24 = scalar_lea.sflag [#allocation3], %s164_s11  ;;  %p1640_p6 = pneg %p1922_p4 }
  0x20   : > { %s1651_s25 = scalar_lea.vmem %s176_s7, 4096  ;;  %s1788_s21 = smov [#allocation2]  }
  0x21   : > { %p1652_p7 = scmp.ne.s32.totalorder %s176_s7, %s1651_s25  ;;  %s1656_s28 = sshll.u32 %s1788_s21, 4  ;;  %s1657_s28 = int_to_ptr.vmem [resolvable:$false] %s1656_s28 }
  0x22   : > { %s1658_s15 = scalar_lea.vmem %s1657_s28, 8192  ;;  %p1659_p11 = scmp.lt.s32.totalorder %s176_s7, %s1657_s28 }
  0x23   : > { %p1654_p9 = pnand %p1652_p7, %p1640_p6  ;;  %p1660_p12 = scmp.lt.s32.totalorder %s1658_s15, %s1651_s25 }
  0x25   : > { %p1655_p10 = pneg %p1654_p9  ;;  %p1661_p0 = por %p1660_p12, %p1659_p11 }
  0x27   : > { %p1662_p3 = pnand %p1661_p0, %p1655_p10 }
  0x29   : > { %1665 = shalt.err (!%p1662_p3)
}
  0x2a   : > { %s1789_s29 = smov 128   ;;  %s1790_s11 = smov 8  }
  0x2b   : > { %1471 = dma.hbm_to_vmem [thread:$0]  (!%p1922_p4), %s174_s23, 4096, %s176_s7, %s165_s24, %s1789_s29, %s1789_s29, %s1790_s11  }
  0x2c   : > { %p192_p1 = scmp.lt.s32.totalorder %s1786_s22, 5 }
  0x2e   : > { %p193_p6 = pnand %p1319_p5, %p192_p1 }
  0x2f   : > { %s198_s21 = sand.u32 (!%p193_p6), 1, %s1762_s16  }
  0x30   : > { %196 = sbr.rel (%p193_p6) target bundleno = 494 (0x1ee), region = 32  ;;  %s1320_s27 = sshll.u32 (!%p193_p6), %s198_s21, 8 }
  0x31   : > { %s199_s5 = scalar_lea.sflag (!%p193_p6), [#allocation3], %s198_s21  ;;  %s1935_s25 = scalar_lea.vmem (!%p193_p6), [#allocation2], %s1320_s27 }
  0x35   : > { %1737 = dma.done.wait (%p1892_p8), %s199_s5, 4096  }
  0x36   : > { %1739 = vsyncadd (%p1892_p8), %s199_s5, 4294963200  ;;  %s1322_s26 = sshll.u32 %s1774_s19, 4  ;;  %v1791_v0 = vmov 0   ;;  %v297_v1 = vld [vmem:[%s1935_s25 + $0xf8] sm:$0xff]  ;;  %v296_v3 = vld [vmem:[%s1935_s25 + $0xf0] sm:$0xff]  ;;  %s1358_s24 = sshll.u32 %s1770_s18, 8 }
  0x37   : > { %1573 = vset.pattern.permute.xlu1 %v1791_v0  ;;  %1572 = vset.pattern.permute.xlu0 %v1791_v0  ;;  %p236_p4 = scmp.lt.s32.totalorder %s1322_s26, 31  ;;  %v281_v2 = vld [vmem:[%s1935_s25 + $0x78] sm:$0xff]  ;;  %v280_v4 = vld [vmem:[%s1935_s25 + $0x70] sm:$0xff]  ;;  %v295_v5 = vld [vmem:[%s1935_s25 + $0xe8] sm:$0xff]  ;;  %v1973_v12 = vstv %s1358_s24  ;;  %s232_s11 = sand.u32 1, %s1750_s13  }
  0x38   : > { %1368 = vmatprep.subr.mxu0 %v297_v1  ;;  %1432 = vmatprep.subr.mxu1 %v297_v1  ;;  %v279_v6 = vld [vmem:[%s1935_s25 + $0x68] sm:$0xff]  ;;  %v294_v7 = vld [vmem:[%s1935_s25 + $0xe0] sm:$0xff]  ;;  %v293_v11 = vld [vmem:[%s1935_s25 + $0xd8] sm:$0xff]  ;;  %s2180_s21 = sshll.u32 %s232_s11, 8  ;;  %s1361_s5 = sshll.u32 %s1770_s18, 1 }
  0x39   : > { %s3037_s26 = smov (!%p236_p4, %s1322_s26), 31  ;;  %1369 = vmatpush3.xpose.msra.mxu0 %v281_v2  ;;  %1448 = vmatpush3.xpose.msra.mxu1 %v281_v2  ;;  %v278_v9 = vld [vmem:[%s1935_s25 + $0x60] sm:$0xff]  ;;  %v277_v13 = vld [vmem:[%s1935_s25 + $0x58] sm:$0xff]  ;;  %v292_v14 = vld [vmem:[%s1935_s25 + $0xd0] sm:$0xff]  ;;  %s2230_s27 = scalar_lea.vmem [#allocation5], %s2180_s21 }
  0x3a   : > { %1370 = vmatprep.subr.mxu0 %v296_v3  ;;  %1433 = vmatprep.subr.mxu1 %v296_v3  ;;  %s1323_s4 = sshll.u32 %s3037_s26, 3  ;;  %v276_v21 = vld [vmem:[%s1935_s25 + $0x50] sm:$0xff]  ;;  %v291_v22 = vld [vmem:[%s1935_s25 + $0xc8] sm:$0xff]  ;;  %v290_v28 = vld [vmem:[%s1935_s25 + $0xc0] sm:$0xff]  ;;  %s1792_s28 = smov [#allocation5]  }
  0x3b   : > { %s1954_s7 = scalar_lea.vmem %s3004_s0, %s1323_s4  ;;  %s1971_s29 = scalar_lea.vmem %s3006_s2, %s1323_s4  ;;  %v275_v27 = vld [vmem:[%s1935_s25 + $0x48] sm:$0xff]  ;;  %v274_v33 = vld [vmem:[%s1935_s25 + $0x40] sm:$0xff]  ;;  %v289_v34 = vld [vmem:[%s1935_s25 + $0xb8] sm:$0xff] }
  0x3c   : > { %v1958_v8 = vld [vmem:[%s1954_s7] sm:$0xff]  ;;  %v973_v15 = vld [vmem:[%s1971_s29 + $0x10] sm:$0xff]  ;;  %v974_v19 = vld [vmem:[%s1971_s29 + $0x18] sm:$0xff]  ;;  %s1670_s15 = sshll.u32 %s1792_s28, 4  ;;  %s1671_s15 = int_to_ptr.vmem [resolvable:$false] %s1670_s15 }
  0x3d   : > { %1371 = vmatpush3.xpose.msra.mxu0 %v280_v4  ;;  %1449 = vmatpush3.xpose.msra.mxu1 %v280_v4  ;;  %v1962_v10 = vld [vmem:[%s1954_s7 + $0x40] sm:$0xff]  ;;  %v991_v17 = vsub.s32 %v973_v15, %v1973_v12  ;;  %v972_v20 = vld [vmem:[%s1971_s29 + $0x8] sm:$0xff]  ;;  %v992_v23 = vsub.s32 %v974_v19, %v1973_v12  ;;  %v978_v31 = vld [vmem:[%s1971_s29 + $0x38] sm:$0xff] }
  0x3e   : > { %1372 = vmatprep.subr.mxu0 %v295_v5  ;;  %1434 = vmatprep.subr.mxu1 %v295_v5  ;;  %v971_v16 = vld [vmem:[%s1971_s29] sm:$0xff]  ;;  %v990_v24 = vsub.s32 %v972_v20, %v1973_v12  ;;  %v976_v25 = vld [vmem:[%s1971_s29 + $0x28] sm:$0xff]  ;;  %v977_v32 = vld [vmem:[%s1971_s29 + $0x30] sm:$0xff]  ;;  %v996_v35 = vsub.s32 %v978_v31, %v1973_v12 }
  0x3f   : > { %1400 = vmatprep.mubr.f32.mxu0 %v1958_v8  ;;  %1416 = vmatprep.mubr.f32.mxu1 %v1962_v10  ;;  %v989_v18 = vsub.s32 %v971_v16, %v1973_v12  ;;  %v975_v26 = vld [vmem:[%s1971_s29 + $0x20] sm:$0xff]  ;;  %v994_v29 = vsub.s32 %v976_v25, %v1973_v12  ;;  %v995_v36 = vsub.s32 %v977_v32, %v1973_v12  ;;  %v980_v37 = vld [vmem:[%s1971_s29 + $0x48] sm:$0xff]  ;;  %v273_v39 = vld [vmem:[%s1935_s25 + $0x38] sm:$0xff]  ;;  %v1005_v32 = vlaneseq }
  0x40   : > { %1015 = vperm.xlu1 %1573, %v991_v17   ;;  %v993_v30 = vsub.s32 %v975_v26, %v1973_v12  ;;  %v979_v38 = vld [vmem:[%s1971_s29 + $0x40] sm:$0xff]  ;;  %v288_v40 = vld [vmem:[%s1935_s25 + $0xb0] sm:$0xff]  ;;  %v998_v41 = vsub.s32 %v980_v37, %v1973_v12  ;;  %v982_v43 = vld [vmem:[%s1971_s29 + $0x58] sm:$0xff] }
  0x41   : > { %1373 = vmatpush3.xpose.msra.mxu0 %v279_v6  ;;  %1450 = vmatpush3.xpose.msra.mxu1 %v279_v6  ;;  %v997_v42 = vsub.s32 %v979_v38, %v1973_v12  ;;  %v981_v44 = vld [vmem:[%s1971_s29 + $0x50] sm:$0xff]  ;;  %v287_v46 = vld [vmem:[%s1935_s25 + $0xa8] sm:$0xff]  ;;  %v1000_v47 = vsub.s32 %v982_v43, %v1973_v12  ;;  %v983_v50 = vld [vmem:[%s1971_s29 + $0x60] sm:$0xff] }
  0x42   : > { %1374 = vmatprep.subr.mxu0 %v294_v7  ;;  %1435 = vmatprep.subr.mxu1 %v294_v7  ;;  %v272_v45 = vld [vmem:[%s1935_s25 + $0x30] sm:$0xff]  ;;  %v999_v48 = vsub.s32 %v981_v44, %v1973_v12  ;;  %v984_v49 = vld [vmem:[%s1971_s29 + $0x68] sm:$0xff]  ;;  %v286_v52 = vld [vmem:[%s1935_s25 + $0xa0] sm:$0xff]  ;;  %v1001_v54 = vsub.s32 %v983_v50, %v1973_v12 }
  0x43   : > { %1009 = vperm.xlu0 %1572, %v989_v18   ;;  %v271_v51 = vld [vmem:[%s1935_s25 + $0x28] sm:$0xff]  ;;  %v1002_v53 = vsub.s32 %v984_v49, %v1973_v12  ;;  %v986_v55 = vld [vmem:[%s1971_s29 + $0x78] sm:$0xff]  ;;  %v985_v56 = vld [vmem:[%s1971_s29 + $0x70] sm:$0xff]  ;;  %s1672_s29 = scalar_lea.vmem %s1671_s15, 8192 }
  0x44   : > { %1018 = vperm.xlu1 %1573, %v992_v23   ;;  %v270_v57 = vld [vmem:[%s1935_s25 + $0x20] sm:$0xff]  ;;  %v285_v58 = vld [vmem:[%s1935_s25 + $0x98] sm:$0xff]  ;;  %v1004_v59 = vsub.s32 %v986_v55, %v1973_v12  ;;  %v1003_v60 = vsub.s32 %v985_v56, %v1973_v12  ;;  %v284_v62 = vld [vmem:[%s1935_s25 + $0x90] sm:$0xff] }
  0x45   : > { %1375 = vmatpush3.xpose.msra.mxu0 %v278_v9  ;;  %1451 = vmatpush3.xpose.msra.mxu1 %v278_v9  ;;  %v269_v61 = vld [vmem:[%s1935_s25 + $0x18] sm:$0xff]  ;;  %v268_v63 = vld [vmem:[%s1935_s25 + $0x10] sm:$0xff]  ;;  %v283_v0 = vld [vmem:[%s1935_s25 + $0x88] sm:$0xff] }
  0x46   : > { %1376 = vmatprep.subr.mxu0 %v293_v11  ;;  %1436 = vmatprep.subr.mxu1 %v293_v11  ;;  %v267_v1 = vld [vmem:[%s1935_s25 + $0x8] sm:$0xff]  ;;  %v282_v2 = vld [vmem:[%s1935_s25 + $0x80] sm:$0xff]  ;;  %v252_v6 = vld [vmem:[%s1954_s7 + $0x10] sm:$0xff] }
  0x47   : > { %1012 = vperm.xlu0 %1572, %v990_v24   ;;  %v266_v3 = vld [vmem:[%s1935_s25] sm:$0xff]  ;;  %v251_v4 = vld [vmem:[%s1954_s7 + $0x8] sm:$0xff]  ;;  %v260_v7 = vld [vmem:[%s1954_s7 + $0x50] sm:$0xff]  ;;  %s1367_s25 = sshll.u32 %s1774_s19, 6  ;;  %s1201_s19 = sshll.u32 %s2230_s27, 4  ;;  %s2939_s19 = int_to_ptr.vmem [resolvable:$true] %s1201_s19 }
  0x48   : > { %1024 = vperm.xlu1 %1573, %v994_v29   ;;  %v259_v5 = vld [vmem:[%s1954_s7 + $0x48] sm:$0xff]  ;;  %v253_v9 = vld [vmem:[%s1954_s7 + $0x18] sm:$0xff]  ;;  %v264_v15 = vld [vmem:[%s1954_s7 + $0x70] sm:$0xff]  ;;  %s1198_s26 = sadd.s32 %s1367_s25, %s1361_s5  ;;  %s1666_s24 = scalar_lea.vmem %s2939_s19, 4096 }
  0x49   : > { %1377 = vmatpush3.xpose.msra.mxu0 %v277_v13  ;;  %1452 = vmatpush3.xpose.msra.mxu1 %v277_v13  ;;  %v261_v11 = vld [vmem:[%s1954_s7 + $0x58] sm:$0xff]  ;;  %v255_v12 = vld [vmem:[%s1954_s7 + $0x28] sm:$0xff]  ;;  %s1363_s18 = sshll.u32 %s1198_s26, 7  ;;  %p1667_p8 = scmp.ne.s32.totalorder %s2939_s19, %s1666_s24 }
  0x4a   : > { %1378 = vmatprep.subr.mxu0 %v292_v14  ;;  %1437 = vmatprep.subr.mxu1 %v292_v14  ;;  %v263_v13 = vld [vmem:[%s1954_s7 + $0x68] sm:$0xff]  ;;  %v256_v14 = vld [vmem:[%s1954_s7 + $0x30] sm:$0xff]  ;;  %v257_v16 = vld [vmem:[%s1954_s7 + $0x38] sm:$0xff]  ;;  %s2935_s6 = scalar_lea.hbm %s3007_s3, %s1363_s18  ;;  %p1673_p9 = scmp.lt.s32.totalorder %s2939_s19, %s1671_s15 }
  0x4b   : > { %1021 = vperm.xlu0 %1572, %v993_v30   ;;  %v265_v17 = vld [vmem:[%s1954_s7 + $0x78] sm:$0xff]  ;;  %p1668_p5 = pnand %p1667_p8, %p1906_p13  ;;  %p1674_p10 = scmp.lt.s32.totalorder %s1672_s29, %s1666_s24 }
  0x4c   : > { %1030 = vperm.xlu1 %1573, %v996_v35  }
  0x4d   : > { %1379 = vmatpush3.xpose.msra.mxu0 %v276_v21  ;;  %1453 = vmatpush3.xpose.msra.mxu1 %v276_v21  ;;  %p1669_p7 = pneg %p1668_p5  ;;  %p1675_p11 = por %p1674_p10, %p1673_p9 }
  0x4e   : > { %1380 = vmatprep.subr.mxu0 %v291_v22  ;;  %1438 = vmatprep.subr.mxu1 %v291_v22 }
  0x4f   : > { %1027 = vperm.xlu0 %1572, %v995_v36   ;;  %p1676_p12 = pnand %p1675_p11, %p1669_p7 }
  0x50   : > { %1036 = vperm.xlu1 %1573, %v998_v41  }
  0x51   : > { %1381 = vmatpush3.xpose.msra.mxu0 %v275_v27  ;;  %1454 = vmatpush3.xpose.msra.mxu1 %v275_v27 }
  0x52   : > { %1382 = vmatprep.subr.mxu0 %v290_v28  ;;  %1439 = vmatprep.subr.mxu1 %v290_v28 }
  0x53   : > { %1033 = vperm.xlu0 %1572, %v997_v42  }
  0x54   : > { %1042 = vperm.xlu1 %1573, %v1000_v47  }
  0x55   : > { %1383 = vmatpush3.xpose.msra.mxu0 %v274_v33  ;;  %1455 = vmatpush3.xpose.msra.mxu1 %v274_v33 }
  0x56   : > { %1384 = vmatprep.subr.mxu0 %v289_v34  ;;  %1440 = vmatprep.subr.mxu1 %v289_v34 }
  0x57   : > { %1039 = vperm.xlu0 %1572, %v999_v48  }
  0x58   : > { %1048 = vperm.xlu1 %1573, %v1002_v53  }
  0x59   : > { %1385 = vmatpush3.xpose.msra.mxu0 %v273_v39  ;;  %1456 = vmatpush3.xpose.msra.mxu1 %v273_v39 }
  0x5a   : > { %1386 = vmatprep.subr.mxu0 %v288_v40  ;;  %1441 = vmatprep.subr.mxu1 %v288_v40  ;;  %v2080_v40 = vand.u32 127, %v1005_v32 }
  0x5b   : > { %1045 = vperm.xlu0 %1572, %v1001_v54  }
  0x5c   : > { %1054 = vperm.xlu1 %1573, %v1004_v59   ;;  %v2094_v48 = vadd.s32 128, %v2080_v40 }
  0x5d   : > { %1387 = vmatpush3.xpose.msra.mxu0 %v272_v45  ;;  %1457 = vmatpush3.xpose.msra.mxu1 %v272_v45 }
  0x5e   : > { %1388 = vmatprep.subr.mxu0 %v287_v46  ;;  %1442 = vmatprep.subr.mxu1 %v287_v46 }
  0x5f   : > { %1051 = vperm.xlu0 %1572, %v1003_v60  }
  0x61   : > { %1389 = vmatpush3.xpose.msra.mxu0 %v271_v51  ;;  %1458 = vmatpush3.xpose.msra.mxu1 %v271_v51 }
  0x62   : > { %1390 = vmatprep.subr.mxu0 %v286_v52  ;;  %1443 = vmatprep.subr.mxu1 %v286_v52 }
  0x65   : > { %1391 = vmatpush3.xpose.msra.mxu0 %v270_v57  ;;  %1459 = vmatpush3.xpose.msra.mxu1 %v270_v57 }
  0x66   : > { %1392 = vmatprep.subr.mxu0 %v285_v58  ;;  %1444 = vmatprep.subr.mxu1 %v285_v58 }
  0x69   : > { %1393 = vmatpush3.xpose.msra.mxu0 %v269_v61  ;;  %1460 = vmatpush3.xpose.msra.mxu1 %v269_v61 }
  0x6a   : > { %1394 = vmatprep.subr.mxu0 %v284_v62  ;;  %1445 = vmatprep.subr.mxu1 %v284_v62 }
  0x6d   : > { %1395 = vmatpush3.xpose.msra.mxu0 %v268_v63  ;;  %1461 = vmatpush3.xpose.msra.mxu1 %v268_v63 }
  0x6e   : > { %1396 = vmatprep.subr.mxu0 %v283_v0  ;;  %1446 = vmatprep.subr.mxu1 %v283_v0 }
  0x71   : > { %1397 = vmatpush3.xpose.msra.mxu0 %v267_v1  ;;  %1462 = vmatpush3.xpose.msra.mxu1 %v267_v1 }
  0x72   : > { %1398 = vmatprep.subr.mxu0 %v282_v2  ;;  %1447 = vmatprep.subr.mxu1 %v282_v2 }
  0x75   : > { %1399 = vmatpush3.xpose.msra.mxu0 %v266_v3  ;;  %1463 = vmatpush3.xpose.msra.mxu1 %v266_v3 }
  0x78   : > { %1401 = vmatmul.mubr.f32.vlgmr.msra.gmra.mxu0 %v1958_v8  ;;  %1417 = vmatmul.mubr.f32.vlgmr.msra.gmra.mxu1 %v1962_v10  ;;  %v254_v8 = vld [vmem:[%s1954_s7 + $0x20] sm:$0xff] }
  0x79   : > { %1402 = vmatprep.mubr.f32.mxu0 %v251_v4  ;;  %1418 = vmatprep.mubr.f32.mxu1 %v259_v5  ;;  %v262_v10 = vld [vmem:[%s1954_s7 + $0x60] sm:$0xff]  ;;  %s2944_s7 = scalar_lea.sflag [#allocation4], %s232_s11 }
  0x7c   : > { %1403 = vmatmul.mubr.f32.gmra.mxu0 %v251_v4  ;;  %1419 = vmatmul.mubr.f32.gmra.mxu1 %v259_v5 }
  0x7d   : > { %1404 = vmatprep.mubr.f32.mxu0 %v252_v6  ;;  %1420 = vmatprep.mubr.f32.mxu1 %v260_v7 }
  0x80   : > { %1405 = vmatmul.mubr.f32.gmra.mxu0 %v252_v6  ;;  %1421 = vmatmul.mubr.f32.gmra.mxu1 %v260_v7 }
  0x81   : > { %1406 = vmatprep.mubr.f32.mxu0 %v253_v9  ;;  %1422 = vmatprep.mubr.f32.mxu1 %v261_v11 }
  0x84   : > { %1407 = vmatmul.mubr.f32.gmra.mxu0 %v253_v9  ;;  %1423 = vmatmul.mubr.f32.gmra.mxu1 %v261_v11 }
  0x85   : > { %1408 = vmatprep.mubr.f32.mxu0 %v254_v8  ;;  %1424 = vmatprep.mubr.f32.mxu1 %v262_v10 }
  0x88   : > { %1409 = vmatmul.mubr.f32.gmra.mxu0 %v254_v8  ;;  %1425 = vmatmul.mubr.f32.gmra.mxu1 %v262_v10 }
  0x89   : > { %1410 = vmatprep.mubr.f32.mxu0 %v255_v12  ;;  %1426 = vmatprep.mubr.f32.mxu1 %v263_v13 }
  0x8c   : > { %1411 = vmatmul.mubr.f32.gmra.mxu0 %v255_v12  ;;  %1427 = vmatmul.mubr.f32.gmra.mxu1 %v263_v13 }
  0x8d   : > { %1412 = vmatprep.mubr.f32.mxu0 %v256_v14  ;;  %1428 = vmatprep.mubr.f32.mxu1 %v264_v15 }
  0x90   : > { %1413 = vmatmul.mubr.f32.gmra.mxu0 %v256_v14  ;;  %1429 = vmatmul.mubr.f32.gmra.mxu1 %v264_v15 }
  0x91   : > { %1414 = vmatprep.mubr.f32.mxu0 %v257_v16  ;;  %1430 = vmatprep.mubr.f32.mxu1 %v265_v17 }
  0x94   : > { %1415 = vmatmul.mubr.f32.gmra.mxu0 %v257_v16  ;;  %1431 = vmatmul.mubr.f32.gmra.mxu1 %v265_v17 }
  0xbe   : > { %v2117_v57 = vpop.permute.xlu0 %1009 }
  0xbf   : > { %vm1056_vm0 = vcmp.eq.s32.totalorder %v2080_v40, %v2117_v57  ;;  %vm1057_vm4 = vcmp.eq.s32.totalorder %v2094_v48, %v2117_v57 }
 0x138   : > { %v2046_v18 = vpop.f32.mrf.mxu0  ;;  %v2048_v19 = vpop.f32.mrf.mxu1 }
 0x139   : > { %v459_v20 = vmul.f32 %v2046_v18, %v2046_v18  ;;  %v475_v27 = vmul.f32 %v2048_v19, %v2048_v19  ;;  %v2101_v51 = vmul.f32 0.87758255, %v2046_v18  ;;  %v2104_v52 = vadd.f32 -0.23971277, %v2046_v18 }
 0x13a   : > { %v2052_v21 = vpop.f32.mrf.mxu0  ;;  %v2056_v24 = vpop.f32.mrf.mxu1  ;;  %v2112_v55 = vmul.f32 0.87758255, %v2048_v19  ;;  %v2115_v56 = vadd.f32 -0.23971277, %v2048_v19  ;;  %vm875_vm1 = vcmp.gt.f32.partialorder %v2046_v18, -0.87758255 }
 0x13b   : > { %v491_v22 = vsub.f32 1.0, %v459_v20  ;;  %v460_v23 = vmul.f32 %v2052_v21, %v2052_v21  ;;  %v476_v29 = vmul.f32 %v2056_v24, %v2056_v24  ;;  %v507_v34 = vsub.f32 1.0, %v475_v27 }
 0x13c   : > { %v2058_v25 = vpop.f32.mrf.mxu0  ;;  %v2071_v33 = vpop.f32.mrf.mxu1  ;;  %v2120_v58 = vmul.f32 0.87758255, %v2052_v21  ;;  %v2128_v60 = vadd.f32 -0.23971277, %v2052_v21  ;;  %v2131_v61 = vmul.f32 0.87758255, %v2056_v24 }
 0x13d   : > { %v2060_v26 = vmax.f32 %v491_v22, 0.0  ;;  %v492_v28 = vsub.f32 1.0, %v460_v23  ;;  %v461_v30 = vmul.f32 %v2058_v25, %v2058_v25  ;;  %v508_v37 = vsub.f32 1.0, %v476_v29 }
 0x13e   : > { %v2069_v31 = vpop.f32.mrf.mxu0  ;;  %v477_v39 = vmul.f32 %v2071_v33, %v2071_v33  ;;  %v2082_v41 = vmax.f32 %v507_v34, 0.0  ;;  %v2086_v44 = vpop.f32.mrf.mxu1  ;;  %v2138_v0 = vadd.f32 -0.23971277, %v2056_v24  ;;  %v2144_v5 = vmul.f32 0.87758255, %v2058_v25 }
 0x13f   : > { %1574 = vrsqrt.f32 %v2060_v26  ;;  %v2073_v35 = vmax.f32 %v492_v28, 0.0  ;;  %v493_v36 = vsub.f32 1.0, %v461_v30  ;;  %v462_v38 = vmul.f32 %v2069_v31, %v2069_v31 }
 0x140   : > { %v2088_v45 = vmax.f32 %v508_v37, 0.0  ;;  %v2090_v46 = vpop.f32.mrf.mxu0  ;;  %v509_v47 = vsub.f32 1.0, %v477_v39  ;;  %v478_v50 = vmul.f32 %v2086_v44, %v2086_v44  ;;  %v2109_v54 = vpop.f32.mrf.mxu1  ;;  %v2147_v6 = vadd.f32 -0.23971277, %v2058_v25 }
 0x141   : > { %1576 = vrsqrt.f32 %v2073_v35  ;;  %v2084_v42 = vmax.f32 %v493_v36, 0.0  ;;  %v494_v43 = vsub.f32 1.0, %v462_v38  ;;  %v463_v53 = vmul.f32 %v2090_v46, %v2090_v46  ;;  %v2189_v37 = vpop.permute.xlu0 %1012 }
 0x142   : > { %v2123_v59 = vpop.f32.mrf.mxu0  ;;  %v2133_v62 = vmax.f32 %v509_v47, 0.0  ;;  %v510_v1 = vsub.f32 1.0, %v478_v50  ;;  %v479_v3 = vmul.f32 %v2109_v54, %v2109_v54  ;;  %vm557_vm2 = vcmp.eq.f32.partialorder %v2060_v26, inf }
 0x143   : > { %1578 = vrsqrt.f32 %v2084_v42  ;;  %v2096_v49 = vmax.f32 %v494_v43, 0.0  ;;  %v495_v2 = vsub.f32 1.0, %v463_v53  ;;  %v464_v7 = vmul.f32 %v2123_v59, %v2123_v59  ;;  %v2208_v53 = vpop.permute.xlu1 %1015 }
 0x144   : > { %1580 = vrsqrt.f32 %v2082_v41  ;;  %vm559_vm3 = vcmp.eq.f32.partialorder %v2060_v26, 0.0  ;;  %v560_v9 = vand.u32 2147483648, %v2060_v26  ;;  %v672_v11 = vand.u32 2147483648, %v2082_v41 }
 0x145   : > { %1582 = vrsqrt.f32 %v2088_v45  ;;  %v2160_v10 = vmul.f32 0.87758255, %v2071_v33  ;;  %v2162_v12 = vmax.f32 %v495_v2, 0.0  ;;  %vm876_vm5 = vcmp.gt.f32.partialorder %v2052_v21, -0.87758255 }
 0x146   : > { %1584 = vrsqrt.f32 %v2096_v49  ;;  %v2167_v15 = vadd.f32 -0.23971277, %v2071_v33  ;;  %v2169_v16 = vmax.f32 %v510_v1, 0.0  ;;  %v511_v17 = vsub.f32 1.0, %v479_v3 }
 0x147   : > { %1586 = vrsqrt.f32 %v2133_v62  ;;  %v496_v23 = vsub.f32 1.0, %v464_v7  ;;  %vm564_vm6 = vcmp.eq.f32.partialorder %v2073_v35, inf  ;;  %vm566_vm7 = vcmp.eq.f32.partialorder %v2073_v35, 0.0  ;;  %v2255_v57 = vpop.permute.xlu1 %1018 }
 0x148   : > { %1588 = vrsqrt.f32 %v2162_v12  ;;  %v679_v27 = vand.u32 2147483648, %v2088_v45  ;;  %v2184_v30 = vmul.f32 0.87758255, %v2069_v31  ;;  %v2187_v32 = vadd.f32 -0.23971277, %v2069_v31 }
 0x149   : > { %vm877_vm8 = vcmp.gt.f32.partialorder %v2058_v25, -0.87758255  ;;  %1590 = vrsqrt.f32 %v2169_v16  ;;  %v2194_v38 = vmul.f32 0.87758255, %v2086_v44  ;;  %v2196_v39 = vmax.f32 %v511_v17, 0.0 }
 0x14a   : > { %vm669_vm9 = vcmp.eq.f32.partialorder %v2082_v41, inf  ;;  %vm676_vm10 = vcmp.eq.f32.partialorder %v2088_v45, inf  ;;  %vm1058_vm11 = vcmp.eq.s32.totalorder %v2080_v40, %v2189_v37  ;;  %v2206_v50 = vmax.f32 %v496_v23, 0.0 }
 0x14b   : > { %vm571_vm12 = vcmp.eq.f32.partialorder %v2084_v42, inf  ;;  %vm573_vm13 = vcmp.eq.f32.partialorder %v2084_v42, 0.0  ;;  %v2220_v7 = vadd.f32 -0.23971277, %v2086_v44  ;;  %vm578_vm14 = vcmp.eq.f32.partialorder %v2096_v49, inf }
 0x14c   : > { %v1575_v63 = vpop.eup %1574  ;;  %vm878_vm15 = vcmp.gt.f32.partialorder %v2069_v31, -0.87758255  ;;  %1592 = vrsqrt.f32 %v2196_v39 }
 0x14d   : > { %v556_v4 = vmul.f32 %v1575_v63, %v2060_v26  ;;  %1594 = vrsqrt.f32 %v2206_v50 }
 0x14e   : > { %v1577_v13 = vpop.eup %1576 }
 0x14f   : > { %v558_v8 = vsel %vm557_vm2, %v2060_v26, %v556_v4  ;;  %v563_v22 = vmul.f32 %v1577_v13, %v2073_v35  ;;  %v567_v26 = vand.u32 2147483648, %v2073_v35  ;;  %vm1059_vm2 = vcmp.eq.s32.totalorder %v2094_v48, %v2189_v37  ;;  %v2329_v37 = vpop.permute.xlu0 %1021 }
 0x150   : > { %v561_v14 = vsel %vm559_vm3, %v560_v9, %v558_v8  ;;  %v1579_v34 = vpop.eup %1578  ;;  %vm580_vm3 = vcmp.eq.f32.partialorder %v2096_v49, 0.0 }
 0x151   : > { %v811_v20 = vmul.f32 0.47942555, %v561_v14  ;;  %v565_v29 = vsel %vm564_vm6, %v2073_v35, %v563_v22  ;;  %v570_v47 = vmul.f32 %v1579_v34, %v2084_v42  ;;  %v1330_v34 = vadd.f32 -0.23971277, %v2090_v46 }
 0x152   : > { %v568_v36 = vsel %vm566_vm7, %v567_v26, %v565_v29  ;;  %v686_v29 = vand.u32 2147483648, %v2133_v62  ;;  %vm879_vm6 = vcmp.gt.f32.partialorder %v2090_v46, -0.87758255  ;;  %vm1060_vm7 = vcmp.eq.s32.totalorder %v2080_v40, %v2208_v53 }
 0x153   : > { %v843_v28 = vsub.f32 %v2101_v51, %v811_v20  ;;  %v812_v43 = vmul.f32 0.47942555, %v568_v36  ;;  %v1581_v51 = vpop.eup %1580  ;;  %v572_v4 = vsel %vm571_vm12, %v2084_v42, %v570_v47  ;;  %v581_v20 = vand.u32 2147483648, %v2096_v49  ;;  %v2271_v47 = vpop.f32.mrf.mxu0 }
 0x154   : > { %v1583_v1 = vpop.eup %1582  ;;  %v668_v14 = vmul.f32 %v1581_v51, %v2082_v41  ;;  %vm592_vm12 = vcmp.eq.f32.partialorder %v2206_v50, inf }
 0x155   : > { %v939_v35 = vsel %vm875_vm1, %v843_v28, %v2104_v52  ;;  %v574_v52 = vand.u32 2147483648, %v2084_v42  ;;  %v844_v3 = vsub.f32 %v2120_v58, %v812_v43  ;;  %v1585_v9 = vpop.eup %1584  ;;  %vm678_vm1 = vcmp.eq.f32.partialorder %v2088_v45, 0.0  ;;  %v2269_v43 = vpop.f32.mrf.mxu1 }
 0x156   : > { %v1088_v63 = vsel %vm1056_vm0, %v939_v35, %v2046_v18  ;;  %v2225_v18 = vmul.f32 0.87758255, %v2090_v46  ;;  %vm671_vm0 = vcmp.eq.f32.partialorder %v2082_v41, 0.0  ;;  %v577_v13 = vmul.f32 %v1585_v9, %v2096_v49  ;;  %v1587_v28 = vpop.eup %1586 }
 0x157   : > { %v1120_v2 = vmul.f32 64.0, %v1088_v63  ;;  %v575_v8 = vsel %vm573_vm13, %v574_v52, %v572_v4  ;;  %v940_v42 = vsel %vm876_vm5, %v844_v3, %v2128_v60  ;;  %v675_v60 = vmul.f32 %v1583_v1, %v2088_v45  ;;  %v1589_v51 = vpop.eup %1588 }
 0x158   : > { %v813_v58 = vmul.f32 0.47942555, %v575_v8  ;;  %v1089_v17 = vsel %vm1057_vm4, %v940_v42, %v2052_v21  ;;  %v579_v26 = vsel %vm578_vm14, %v2096_v49, %v577_v13  ;;  %vm683_vm5 = vcmp.eq.f32.partialorder %v2133_v62, inf }
 0x159   : > { %1152 = vst [vmem:[%s2230_s27] sm:$0xff] %v1120_v2  ;;  %v1121_v22 = vmul.f32 64.0, %v1089_v17  ;;  %v582_v21 = vsel %vm580_vm3, %v581_v20, %v579_v26  ;;  %vm685_vm4 = vcmp.eq.f32.partialorder %v2133_v62, 0.0  ;;  %v2264_v49 = vmul.f32 0.87758255, %v2109_v54  ;;  %v2317_v20 = vpop.permute.xlu1 %1024 }
 0x15a   : > { %v845_v23 = vsub.f32 %v2144_v5, %v813_v58  ;;  %v814_v36 = vmul.f32 0.47942555, %v582_v21  ;;  %v2267_v35 = vadd.f32 -0.23971277, %v2109_v54  ;;  %v670_v63 = vsel %vm669_vm9, %v2082_v41, %v668_v14  ;;  %v1591_v58 = vpop.eup %1590 }
 0x15b   : > { %1153 = vst [vmem:[%s2230_s27 + $0x8] sm:$0xff] %v1121_v22  ;;  %v2285_v1 = vmul.f32 0.87758255, %v2123_v59  ;;  %v682_v2 = vmul.f32 %v1587_v28, %v2133_v62  ;;  %v584_v9 = vmul.f32 %v1589_v51, %v2162_v12  ;;  %v588_v8 = vand.u32 2147483648, %v2162_v12  ;;  %v1593_v28 = vpop.eup %1592 }
 0x15c   : > { %v941_v5 = vsel %vm877_vm8, %v845_v23, %v2147_v6  ;;  %v677_v6 = vsel %vm676_vm10, %v2088_v45, %v675_v60  ;;  %v846_v4 = vsub.f32 %v2184_v30, %v814_v36  ;;  %vm585_vm8 = vcmp.eq.f32.partialorder %v2162_v12, inf  ;;  %v2324_v45 = vpop.f32.mrf.mxu0 }
 0x15d   : > { %v1090_v52 = vsel %vm1058_vm11, %v941_v5, %v2058_v25  ;;  %v480_v25 = vmul.f32 %v2269_v43, %v2269_v43  ;;  %v465_v42 = vmul.f32 %v2271_v47, %v2271_v47  ;;  %vm690_vm9 = vcmp.eq.f32.partialorder %v2169_v16, inf }
 0x15e   : > { %v1122_v3 = vmul.f32 64.0, %v1090_v52  ;;  %v942_v13 = vsel %vm878_vm15, %v846_v4, %v2187_v32  ;;  %v586_v30 = vsel %vm585_vm8, %v2162_v12, %v584_v9  ;;  %vm587_vm10 = vcmp.eq.f32.partialorder %v2162_v12, 0.0  ;;  %v2319_v12 = vpop.f32.mrf.mxu1 }
 0x15f   : > { %v673_v14 = vsel %vm671_vm0, %v672_v11, %v670_v63  ;;  %v680_v17 = vsel %vm678_vm1, %v679_v27, %v677_v6  ;;  %v1091_v32 = vsel %vm1059_vm2, %v942_v13, %v2069_v31  ;;  %v589_v60 = vsel %vm587_vm10, %v588_v8, %v586_v30  ;;  %v1595_v63 = vpop.eup %1594  ;;  %v2370_v30 = vpop.f32.mrf.mxu0 }
 0x160   : > { %1154 = vst [vmem:[%s2230_s27 + $0x10] sm:$0xff] %v1122_v3  ;;  %v684_v41 = vsel %vm683_vm5, %v2133_v62, %v682_v2  ;;  %v1123_v11 = vmul.f32 64.0, %v1091_v32  ;;  %v815_v22 = vmul.f32 0.47942555, %v589_v60  ;;  %v497_v23 = vsub.f32 1.0, %v465_v42 }
 0x161   : > { %v689_v27 = vmul.f32 %v1591_v58, %v2169_v16  ;;  %vm692_vm11 = vcmp.eq.f32.partialorder %v2169_v16, 0.0  ;;  %v693_v31 = vand.u32 2147483648, %v2169_v16  ;;  %v512_v26 = vsub.f32 1.0, %v480_v25  ;;  %v2366_v25 = vpop.f32.mrf.mxu1 }
 0x162   : > { %v2331_v21 = vmul.f32 0.47942555, %v673_v14  ;;  %1155 = vst [vmem:[%s2230_s27 + $0x18] sm:$0xff] %v1123_v11  ;;  %v847_v5 = vsub.f32 %v2225_v18, %v815_v22  ;;  %v2335_v36 = vmax.f32 %v497_v23, 0.0  ;;  %v481_v51 = vmul.f32 %v2319_v12, %v2319_v12 }
 0x163   : > { %v2339_v6 = vmul.f32 0.47942555, %v680_v17  ;;  %v687_v52 = vsel %vm685_vm4, %v686_v29, %v684_v41  ;;  %vm880_vm13 = vcmp.gt.f32.partialorder %v2123_v59, -0.87758255  ;;  %v466_v2 = vmul.f32 %v2324_v45, %v2324_v45  ;;  %v2375_v17 = vpop.permute.xlu0 %1027 }
 0x164   : > { %vm1061_vm14 = vcmp.eq.s32.totalorder %v2094_v48, %v2208_v53  ;;  %v943_v18 = vsel %vm879_vm6, %v847_v5, %v1330_v34  ;;  %v591_v3 = vmul.f32 %v1595_v63, %v2206_v50  ;;  %v595_v4 = vand.u32 2147483648, %v2206_v50  ;;  %v2364_v34 = vpop.permute.xlu1 %1030 }
 0x165   : > { %1596 = vrsqrt.f32 %v2335_v36  ;;  %v691_v62 = vsel %vm690_vm9, %v2169_v16, %v689_v27  ;;  %v1092_v29 = vsel %vm1060_vm7, %v943_v18, %v2090_v46  ;;  %v696_v9 = vmul.f32 %v1593_v28, %v2196_v39 }
 0x166   : > { %v2362_v8 = vmax.f32 %v512_v26, 0.0  ;;  %v1124_v42 = vmul.f32 64.0, %v1092_v29  ;;  %v593_v58 = vsel %vm592_vm12, %v2206_v50, %v591_v3  ;;  %vm594_vm15 = vcmp.eq.f32.partialorder %v2206_v50, 0.0 }
 0x167   : > { %v513_v13 = vsub.f32 1.0, %v481_v51  ;;  %v2372_v14 = vmul.f32 0.47942555, %v687_v52  ;;  %vm697_vm0 = vcmp.eq.f32.partialorder %v2196_v39, inf  ;;  %v596_v46 = vsel %vm594_vm15, %v595_v4, %v593_v58  ;;  %v2398_v51 = vpop.f32.mrf.mxu1  ;;  %v2415_v29 = vpop.permute.xlu0 %1033 }
 0x168   : > { %v498_v32 = vsub.f32 1.0, %v466_v2  ;;  %v694_v60 = vsel %vm692_vm11, %v693_v31, %v691_v62  ;;  %1156 = vst [vmem:[%s2230_s27 + $0x20] sm:$0xff] %v1124_v42  ;;  %v816_v41 = vmul.f32 0.47942555, %v596_v46  ;;  %v482_v50 = vmul.f32 %v2366_v25, %v2366_v25  ;;  %v1037_v63 = vpop.permute.xlu1 %1036 }
 0x169   : > { %v2380_v11 = vmax.f32 %v513_v13, 0.0  ;;  %v698_v22 = vsel %vm697_vm0, %v2196_v39, %v696_v9  ;;  %1598 = vrsqrt.f32 %v2362_v8  ;;  %v467_v27 = vmul.f32 %v2370_v30, %v2370_v30 }
 0x16a   : > { %v2386_v23 = vmax.f32 %v498_v32, 0.0  ;;  %v700_v26 = vand.u32 2147483648, %v2196_v39  ;;  %v848_v16 = vsub.f32 %v2285_v1, %v816_v41  ;;  %v1331_v31 = vadd.f32 -0.23971277, %v2123_v59 }
 0x16b   : > { %1600 = vrsqrt.f32 %v2380_v11  ;;  %v859_v28 = vsub.f32 %v2112_v55, %v2331_v21  ;;  %v830_v5 = vmul.f32 0.47942555, %v694_v60  ;;  %vm699_vm1 = vcmp.eq.f32.partialorder %v2196_v39, 0.0 }
 0x16c   : > { %1602 = vrsqrt.f32 %v2386_v23  ;;  %v860_v52 = vsub.f32 %v2131_v61, %v2339_v6  ;;  %v701_v2 = vsel %vm699_vm1, %v700_v26, %v698_v22  ;;  %v944_v1 = vsel %vm880_vm13, %v848_v16, %v1331_v31  ;;  %v2455_v16 = vpop.f32.mrf.mxu0  ;;  %v2515_v6 = vpop.f32.mrf.mxu1 }
 0x16d   : > { %v514_v18 = vsub.f32 1.0, %v482_v50  ;;  %vm1074_vm2 = vcmp.eq.s32.totalorder %v2080_v40, %v1037_v63  ;;  %vm1075_vm3 = vcmp.eq.s32.totalorder %v2094_v48, %v1037_v63  ;;  %v861_v39 = vsub.f32 %v2160_v10, %v2372_v14 }
 0x16e   : > { %v1093_v3 = vsel %vm1061_vm14, %v944_v1, %v2123_v59  ;;  %v2413_v4 = vmul.f32 0.87758255, %v2269_v43  ;;  %v499_v62 = vsub.f32 1.0, %v467_v27  ;;  %v2418_v42 = vadd.f32 -0.23971277, %v2269_v43 }
 0x16f   : > { %v1125_v9 = vmul.f32 64.0, %v1093_v3  ;;  %v2420_v58 = vmax.f32 %v514_v18, 0.0  ;;  %v483_v10 = vmul.f32 %v2398_v51, %v2398_v51  ;;  %vm1072_vm5 = vcmp.eq.s32.totalorder %v2080_v40, %v2415_v29 }
 0x170   : > { %v862_v59 = vsub.f32 %v2194_v38, %v830_v5  ;;  %v2427_v53 = vmul.f32 0.47942555, %v701_v2  ;;  %v785_v13 = vmul.f32 0.87758255, %v2271_v47  ;;  %v2430_v14 = vmax.f32 %v499_v62, 0.0 }
 0x171   : > { %vm1073_vm4 = vcmp.eq.s32.totalorder %v2094_v48, %v2415_v29  ;;  %1157 = vst [vmem:[%s2230_s27 + $0x28] sm:$0xff] %v1125_v9  ;;  %v707_v46 = vand.u32 2147483648, %v2362_v8  ;;  %v1332_v32 = vadd.f32 -0.23971277, %v2271_v47  ;;  %v2438_v60 = vmul.f32 0.87758255, %v2319_v12 }
 0x172   : > { %1604 = vrsqrt.f32 %v2420_v58  ;;  %v1597_v38 = vpop.eup %1596  ;;  %vm599_vm6 = vcmp.eq.f32.partialorder %v2335_v36, inf  ;;  %vm601_vm7 = vcmp.eq.f32.partialorder %v2335_v36, 0.0  ;;  %vm881_vm8 = vcmp.gt.f32.partialorder %v2271_v47, -0.87758255 }
 0x173   : > { %v2445_v41 = vadd.f32 -0.23971277, %v2319_v12  ;;  %1606 = vrsqrt.f32 %v2430_v14  ;;  %vm1062_vm9 = vcmp.eq.s32.totalorder %v2080_v40, %v2255_v57  ;;  %v598_v50 = vmul.f32 %v1597_v38, %v2335_v36 }
 0x174   : > { %v602_v22 = vand.u32 2147483648, %v2335_v36  ;;  %v2453_v27 = vmul.f32 0.87758255, %v2324_v45  ;;  %v515_v26 = vsub.f32 1.0, %v483_v10  ;;  %v863_v31 = vsub.f32 %v2264_v49, %v2427_v53 }
 0x175   : > { %v2460_v5 = vadd.f32 -0.23971277, %v2324_v45  ;;  %vm893_vm10 = vcmp.gt.f32.partialorder %v2071_v33, -0.87758255  ;;  %vm894_vm11 = vcmp.gt.f32.partialorder %v2086_v44, -0.87758255  ;;  %v600_v2 = vsel %vm599_vm6, %v2335_v36, %v598_v50 }
 0x176   : > { %vm711_vm12 = vcmp.eq.f32.partialorder %v2380_v11, inf  ;;  %v2466_v1 = vmax.f32 %v515_v26, 0.0  ;;  %v957_v18 = vsel %vm893_vm10, %v861_v39, %v2167_v15  ;;  %v958_v3 = vsel %vm894_vm11, %v862_v59, %v2220_v7  ;;  %v1599_v50 = vpop.eup %1598 }
 0x177   : > { %vm704_vm13 = vcmp.eq.f32.partialorder %v2362_v8, inf  ;;  %v603_v62 = vsel %vm601_vm7, %v602_v22, %v600_v2  ;;  %v1106_v9 = vsel %vm1074_vm2, %v957_v18, %v2071_v33  ;;  %v1107_v10 = vsel %vm1075_vm3, %v958_v3, %v2086_v44 }
 0x178   : > { %v468_v38 = vmul.f32 %v2455_v16, %v2455_v16  ;;  %v817_v15 = vmul.f32 0.47942555, %v603_v62  ;;  %v714_v7 = vand.u32 2147483648, %v2380_v11  ;;  %vm606_vm14 = vcmp.eq.f32.partialorder %v2386_v23, inf  ;;  %v1601_v39 = vpop.eup %1600 }
 0x179   : > { %v609_v36 = vand.u32 2147483648, %v2386_v23  ;;  %vm713_vm15 = vcmp.eq.f32.partialorder %v2380_v11, 0.0  ;;  %1608 = vrsqrt.f32 %v2466_v1  ;;  %v1138_v33 = vmul.f32 64.0, %v1106_v9  ;;  %v1603_v63 = vpop.eup %1602 }
 0x17a   : > { %v1139_v44 = vmul.f32 64.0, %v1107_v10  ;;  %vm891_vm0 = vcmp.gt.f32.partialorder %v2048_v19, -0.87758255  ;;  %vm706_vm1 = vcmp.eq.f32.partialorder %v2362_v8, 0.0  ;;  %v849_v59 = vsub.f32 %v785_v13, %v817_v15 }
 0x17b   : > { %v710_v22 = vmul.f32 %v1601_v39, %v2380_v11  ;;  %vm882_vm2 = vcmp.gt.f32.partialorder %v2324_v45, -0.87758255  ;;  %vm892_vm3 = vcmp.gt.f32.partialorder %v2056_v24, -0.87758255  ;;  %v955_v26 = vsel %vm891_vm0, %v859_v28, %v2115_v56  ;;  %1170 = vst [vmem:[%s2230_s27 + $0x90] sm:$0xff] %v1138_v33 }
 0x17c   : > { %vm1063_vm6 = vcmp.eq.s32.totalorder %v2094_v48, %v2255_v57  ;;  %v605_v2 = vmul.f32 %v1603_v63, %v2386_v23  ;;  %1171 = vst [vmem:[%s2230_s27 + $0x98] sm:$0xff] %v1139_v44  ;;  %v956_v13 = vsel %vm892_vm3, %v860_v52, %v2138_v0  ;;  %v1104_v18 = vsel %vm1072_vm5, %v955_v26, %v2048_v19 }
 0x17d   : > { %v500_v55 = vsub.f32 1.0, %v468_v38  ;;  %v703_v56 = vmul.f32 %v1599_v50, %v2362_v8  ;;  %v945_v21 = vsel %vm881_vm8, %v849_v59, %v1332_v32  ;;  %v1105_v28 = vsel %vm1073_vm4, %v956_v13, %v2056_v24 }
 0x17e   : > { %v1136_v61 = vmul.f32 64.0, %v1104_v18  ;;  %v1094_v19 = vsel %vm1062_vm9, %v945_v21, %v2271_v47  ;;  %v607_v0 = vsel %vm606_vm14, %v2386_v23, %v605_v2  ;;  %vm608_vm5 = vcmp.eq.f32.partialorder %v2386_v23, 0.0 }
 0x17f   : > { %v1137_v52 = vmul.f32 64.0, %v1105_v28  ;;  %v1126_v32 = vmul.f32 64.0, %v1094_v19  ;;  %v610_v29 = vsel %vm608_vm5, %v609_v36, %v607_v0  ;;  %v787_v24 = vmul.f32 0.87758255, %v2370_v30  ;;  %v1605_v62 = vpop.eup %1604 }
 0x180   : > { %1168 = vst [vmem:[%s2230_s27 + $0x80] sm:$0xff] %v1136_v61  ;;  %v2527_v3 = vmax.f32 %v500_v55, 0.0  ;;  %v712_v47 = vsel %vm711_vm12, %v2380_v11, %v710_v22  ;;  %v818_v9 = vmul.f32 0.47942555, %v610_v29  ;;  %vm718_vm4 = vcmp.eq.f32.partialorder %v2420_v58, inf  ;;  %v1607_v10 = vpop.eup %1606  ;;  %v2553_v22 = vpop.f32.mrf.mxu0 }
 0x181   : > { %1169 = vst [vmem:[%s2230_s27 + $0x88] sm:$0xff] %v1137_v52  ;;  %v484_v23 = vmul.f32 %v2515_v6, %v2515_v6  ;;  %v705_v38 = vsel %vm704_vm13, %v2362_v8, %v703_v56  ;;  %1158 = vst [vmem:[%s2230_s27 + $0x30] sm:$0xff] %v1126_v32  ;;  %v717_v50 = vmul.f32 %v1605_v62, %v2420_v58  ;;  %vm720_vm7 = vcmp.eq.f32.partialorder %v2420_v58, 0.0  ;;  %v2574_v56 = vpop.f32.mrf.mxu1  ;;  %v1040_v52 = vpop.permute.xlu0 %1039 }
 0x182   : > { %1610 = vrsqrt.f32 %v2527_v3  ;;  %vm1064_vm8 = vcmp.eq.s32.totalorder %v2080_v40, %v2329_v37  ;;  %v850_v15 = vsub.f32 %v2453_v27, %v818_v9  ;;  %v721_v36 = vand.u32 2147483648, %v2420_v58 }
 0x183   : > { %v612_v39 = vmul.f32 %v1607_v10, %v2430_v14  ;;  %vm613_vm9 = vcmp.eq.f32.partialorder %v2430_v14, inf  ;;  %v715_v33 = vsel %vm713_vm15, %v714_v7, %v712_v47  ;;  %v719_v44 = vsel %vm718_vm4, %v2420_v58, %v717_v50 }
 0x184   : > { %v616_v63 = vand.u32 2147483648, %v2430_v14  ;;  %v516_v59 = vsub.f32 1.0, %v484_v23  ;;  %v708_v27 = vsel %vm706_vm1, %v707_v46, %v705_v38  ;;  %v946_v26 = vsel %vm882_vm2, %v850_v15, %v2460_v5 }
 0x185   : > { %v614_v2 = vsel %vm613_vm9, %v2430_v14, %v612_v39  ;;  %vm615_vm10 = vcmp.eq.f32.partialorder %v2430_v14, 0.0  ;;  %v1095_v11 = vsel %vm1063_vm6, %v946_v26, %v2324_v45  ;;  %v722_v7 = vsel %vm720_vm7, %v721_v36, %v719_v44  ;;  %v1043_v14 = vpop.permute.xlu1 %1042 }
 0x186   : > { %v617_v13 = vsel %vm615_vm10, %v616_v63, %v614_v2  ;;  %v2570_v8 = vmax.f32 %v516_v59, 0.0  ;;  %v833_v46 = vmul.f32 0.47942555, %v715_v33  ;;  %v1127_v18 = vmul.f32 64.0, %v1095_v11  ;;  %v1609_v21 = vpop.eup %1608 }
 0x187   : > { %v819_v55 = vmul.f32 0.47942555, %v617_v13  ;;  %v469_v5 = vmul.f32 %v2553_v22, %v2553_v22  ;;  %v832_v28 = vmul.f32 0.47942555, %v708_v27  ;;  %v802_v57 = vmul.f32 0.87758255, %v2366_v25  ;;  %v2624_v27 = vpop.f32.mrf.mxu0 }
 0x188   : > { %v1349_v45 = vadd.f32 -0.23971277, %v2366_v25  ;;  %1612 = vrsqrt.f32 %v2570_v8  ;;  %vm1078_vm11 = vcmp.eq.s32.totalorder %v2080_v40, %v1043_v14  ;;  %1159 = vst [vmem:[%s2230_s27 + $0x38] sm:$0xff] %v1127_v18  ;;  %v834_v58 = vmul.f32 0.47942555, %v722_v7 }
 0x189   : > { %v851_v61 = vsub.f32 %v787_v24, %v819_v55  ;;  %v1334_v19 = vadd.f32 -0.23971277, %v2370_v30  ;;  %v501_v0 = vsub.f32 1.0, %v469_v5  ;;  %vm1079_vm12 = vcmp.eq.s32.totalorder %v2094_v48, %v1043_v14 }
 0x18a   : > { %vm883_vm13 = vcmp.gt.f32.partialorder %v2370_v30, -0.87758255  ;;  %v2585_v32 = vmul.f32 0.87758255, %v2398_v51  ;;  %v2588_v29 = vadd.f32 -0.23971277, %v2398_v51  ;;  %v485_v62 = vmul.f32 %v2574_v56, %v2574_v56 }
 0x18b   : > { %vm1076_vm14 = vcmp.eq.s32.totalorder %v2080_v40, %v1040_v52  ;;  %vm1077_vm15 = vcmp.eq.s32.totalorder %v2094_v48, %v1040_v52  ;;  %v865_v24 = vsub.f32 %v2438_v60, %v833_v46  ;;  %v947_v47 = vsel %vm883_vm13, %v851_v61, %v1334_v19 }
 0x18c   : > { %v724_v9 = vmul.f32 %v1609_v21, %v2466_v1  ;;  %v2596_v23 = vmax.f32 %v501_v0, 0.0  ;;  %v864_v10 = vsub.f32 %v2413_v4, %v832_v28  ;;  %v1096_v38 = vsel %vm1064_vm8, %v947_v47, %v2370_v30 }
 0x18d   : > { %vm725_vm0 = vcmp.eq.f32.partialorder %v2466_v1, inf  ;;  %v517_v50 = vsub.f32 1.0, %v485_v62  ;;  %v866_v15 = vsub.f32 %v802_v57, %v834_v58  ;;  %v1128_v36 = vmul.f32 64.0, %v1096_v38  ;;  %v1046_v38 = vpop.permute.xlu0 %1045 }
 0x18e   : > { %v728_v60 = vand.u32 2147483648, %v2466_v1  ;;  %1614 = vrsqrt.f32 %v2596_v23  ;;  %vm727_vm1 = vcmp.eq.f32.partialorder %v2466_v1, 0.0  ;;  %vm620_vm2 = vcmp.eq.f32.partialorder %v2527_v3, inf }
 0x18f   : > { %v788_v4 = vmul.f32 0.87758255, %v2455_v16  ;;  %v2609_v39 = vmax.f32 %v517_v50, 0.0  ;;  %vm897_vm3 = vcmp.gt.f32.partialorder %v2319_v12, -0.87758255  ;;  %v1611_v30 = vpop.eup %1610  ;;  %1160 = vst [vmem:[%s2230_s27 + $0x40] sm:$0xff] %v1128_v36  ;;  %v726_v33 = vsel %vm725_vm0, %v2466_v1, %v724_v9 }
 0x190   : > { %vm622_vm6 = vcmp.eq.f32.partialorder %v2527_v3, 0.0  ;;  %v623_v44 = vand.u32 2147483648, %v2527_v3  ;;  %vm884_vm5 = vcmp.gt.f32.partialorder %v2455_v16, -0.87758255  ;;  %v961_v63 = vsel %vm897_vm3, %v865_v24, %v2445_v41 }
 0x191   : > { %vm1065_vm4 = vcmp.eq.s32.totalorder %v2094_v48, %v2329_v37  ;;  %v619_v59 = vmul.f32 %v1611_v30, %v2527_v3  ;;  %1616 = vrsqrt.f32 %v2609_v39  ;;  %vm898_vm7 = vcmp.gt.f32.partialorder %v2366_v25, -0.87758255 }
 0x192   : > { %vm895_vm8 = vcmp.gt.f32.partialorder %v2109_v54, -0.87758255  ;;  %v962_v26 = vsel %vm898_vm7, %v866_v15, %v1349_v45  ;;  %v1110_v2 = vsel %vm1078_vm11, %v961_v63, %v2319_v12  ;;  %vm896_vm9 = vcmp.gt.f32.partialorder %v2269_v43, -0.87758255  ;;  %v2641_v12 = vpop.f32.mrf.mxu1 }
 0x193   : > { %v959_v41 = vsel %vm895_vm8, %v863_v31, %v2267_v35  ;;  %v621_v11 = vsel %vm620_vm2, %v2527_v3, %v619_v59  ;;  %v1111_v7 = vsel %vm1079_vm12, %v962_v26, %v2366_v25  ;;  %v1142_v13 = vmul.f32 64.0, %v1110_v2  ;;  %v2654_v3 = vpop.f32.mrf.mxu0  ;;  %v2709_v2 = vpop.permute.xlu1 %1048 }
 0x194   : > { %v960_v46 = vsel %vm896_vm9, %v864_v10, %v2418_v42  ;;  %v624_v18 = vsel %vm622_vm6, %v623_v44, %v621_v11  ;;  %v1143_v55 = vmul.f32 64.0, %v1111_v7  ;;  %v1108_v49 = vsel %vm1076_vm14, %v959_v41, %v2109_v54 }
 0x195   : > { %v1109_v35 = vsel %vm1077_vm15, %v960_v46, %v2269_v43  ;;  %v820_v25 = vmul.f32 0.47942555, %v624_v18  ;;  %1174 = vst [vmem:[%s2230_s27 + $0xb0] sm:$0xff] %v1142_v13  ;;  %v1140_v42 = vmul.f32 64.0, %v1108_v49  ;;  %v470_v31 = vmul.f32 %v2624_v27, %v2624_v27  ;;  %v1613_v5 = vpop.eup %1612  ;;  %v2722_v49 = vpop.f32.mrf.mxu0 }
 0x196   : > { %v1141_v53 = vmul.f32 64.0, %v1109_v35  ;;  %v1335_v14 = vadd.f32 -0.23971277, %v2455_v16  ;;  %v2658_v54 = vmul.f32 0.87758255, %v2515_v6  ;;  %1175 = vst [vmem:[%s2230_s27 + $0xb8] sm:$0xff] %v1143_v55  ;;  %v486_v43 = vmul.f32 %v2641_v12, %v2641_v12 }
 0x197   : > { %v2661_v21 = vadd.f32 -0.23971277, %v2515_v6  ;;  %v852_v28 = vsub.f32 %v788_v4, %v820_v25  ;;  %v731_v57 = vmul.f32 %v1613_v5, %v2570_v8  ;;  %vm732_vm10 = vcmp.eq.f32.partialorder %v2570_v8, inf  ;;  %1172 = vst [vmem:[%s2230_s27 + $0xa0] sm:$0xff] %v1140_v42 }
 0x198   : > { %1173 = vst [vmem:[%s2230_s27 + $0xa8] sm:$0xff] %v1141_v53  ;;  %v502_v45 = vsub.f32 1.0, %v470_v31  ;;  %v729_v58 = vsel %vm727_vm1, %v728_v60, %v726_v33  ;;  %v735_v61 = vand.u32 2147483648, %v2570_v8  ;;  %v518_v19 = vsub.f32 1.0, %v486_v43 }
 0x199   : > { %v471_v0 = vmul.f32 %v2654_v3, %v2654_v3  ;;  %v948_v52 = vsel %vm884_vm5, %v852_v28, %v1335_v14  ;;  %v733_v62 = vsel %vm732_vm10, %v2570_v8, %v731_v57  ;;  %vm734_vm11 = vcmp.eq.f32.partialorder %v2570_v8, 0.0  ;;  %v2689_v8 = vpop.f32.mrf.mxu1 }
 0x19a   : > { %v2679_v24 = vmax.f32 %v502_v45, 0.0  ;;  %v1097_v1 = vsel %vm1065_vm4, %v948_v52, %v2455_v16  ;;  %v736_v47 = vsel %vm734_vm11, %v735_v61, %v733_v62  ;;  %v2685_v9 = vmax.f32 %v518_v19, 0.0  ;;  %v2748_v61 = vpop.f32.mrf.mxu0 }
 0x19b   : > { %v503_v10 = vsub.f32 1.0, %v471_v0  ;;  %v1615_v50 = vpop.eup %1614  ;;  %v835_v15 = vmul.f32 0.47942555, %v729_v58  ;;  %v1129_v36 = vmul.f32 64.0, %v1097_v1  ;;  %v789_v60 = vmul.f32 0.87758255, %v2553_v22 }
 0x19c   : > { %1618 = vrsqrt.f32 %v2679_v24  ;;  %vm1080_vm12 = vcmp.eq.s32.totalorder %v2080_v40, %v1046_v38  ;;  %vm1066_vm13 = vcmp.eq.s32.totalorder %v2080_v40, %v2317_v20  ;;  %v836_v37 = vmul.f32 0.47942555, %v736_v47 }
 0x19d   : > { %v626_v16 = vmul.f32 %v1615_v50, %v2596_v23  ;;  %vm885_vm14 = vcmp.gt.f32.partialorder %v2553_v22, -0.87758255  ;;  %1620 = vrsqrt.f32 %v2685_v9  ;;  %vm1081_vm15 = vcmp.eq.s32.totalorder %v2094_v48, %v1046_v38  ;;  %1161 = vst [vmem:[%s2230_s27 + $0x48] sm:$0xff] %v1129_v36 }
 0x19e   : > { %vm627_vm0 = vcmp.eq.f32.partialorder %v2596_v23, inf  ;;  %v630_v4 = vand.u32 2147483648, %v2596_v23  ;;  %v1336_v30 = vadd.f32 -0.23971277, %v2553_v22  ;;  %v805_v33 = vmul.f32 0.87758255, %v2574_v56  ;;  %v1617_v44 = vpop.eup %1616 }
 0x19f   : > { %v628_v63 = vsel %vm627_vm0, %v2596_v23, %v626_v16  ;;  %vm629_vm1 = vcmp.eq.f32.partialorder %v2596_v23, 0.0  ;;  %v2705_v59 = vmax.f32 %v503_v10, 0.0  ;;  %v487_v26 = vmul.f32 %v2689_v8, %v2689_v8 }
 0x1a0   : > { %v867_v41 = vsub.f32 %v2585_v32, %v835_v15  ;;  %v631_v11 = vsel %vm629_vm1, %v630_v4, %v628_v63  ;;  %v738_v7 = vmul.f32 %v1617_v44, %v2609_v39  ;;  %vm739_vm2 = vcmp.eq.f32.partialorder %v2609_v39, inf }
 0x1a1   : > { %vm1082_vm3 = vcmp.eq.s32.totalorder %v2080_v40, %v2709_v2  ;;  %v868_v13 = vsub.f32 %v2658_v54, %v836_v37  ;;  %v821_v23 = vmul.f32 0.47942555, %v631_v11  ;;  %v742_v46 = vand.u32 2147483648, %v2609_v39 }
 0x1a2   : > { %1622 = vrsqrt.f32 %v2705_v59  ;;  %v740_v18 = vsel %vm739_vm2, %v2609_v39, %v738_v7  ;;  %vm741_vm6 = vcmp.eq.f32.partialorder %v2609_v39, 0.0  ;;  %v1352_v32 = vadd.f32 -0.23971277, %v2574_v56 }
 0x1a3   : > { %v519_v55 = vsub.f32 1.0, %v487_v26  ;;  %v853_v35 = vsub.f32 %v789_v60, %v821_v23  ;;  %v743_v25 = vsel %vm741_vm6, %v742_v46, %v740_v18  ;;  %vm901_vm5 = vcmp.gt.f32.partialorder %v2574_v56, -0.87758255 }
 0x1a4   : > { %vm899_vm4 = vcmp.gt.f32.partialorder %v2398_v51, -0.87758255  ;;  %v837_v42 = vmul.f32 0.47942555, %v743_v25  ;;  %vm900_vm7 = vcmp.gt.f32.partialorder %v2515_v6, -0.87758255  ;;  %v472_v54 = vmul.f32 %v2722_v49, %v2722_v49 }
 0x1a5   : > { %v2726_v53 = vmax.f32 %v519_v55, 0.0  ;;  %v963_v31 = vsel %vm899_vm4, %v867_v41, %v2588_v29  ;;  %v949_v39 = vsel %vm885_vm14, %v853_v35, %v1336_v30  ;;  %v964_v5 = vsel %vm900_vm7, %v868_v13, %v2661_v21  ;;  %v2746_v21 = vpop.f32.mrf.mxu1 }
 0x1a6   : > { %v1112_v14 = vsel %vm1080_vm12, %v963_v31, %v2398_v51  ;;  %v1098_v43 = vsel %vm1066_vm13, %v949_v39, %v2553_v22  ;;  %v869_v28 = vsub.f32 %v805_v33, %v837_v42  ;;  %v1113_v29 = vsel %vm1081_vm15, %v964_v5, %v2515_v6 }
 0x1a7   : > { %1624 = vrsqrt.f32 %v2726_v53  ;;  %v1130_v51 = vmul.f32 64.0, %v1098_v43  ;;  %v1144_v57 = vmul.f32 64.0, %v1112_v14  ;;  %v1145_v45 = vmul.f32 64.0, %v1113_v29  ;;  %v2785_v30 = vpop.f32.mrf.mxu1 }
 0x1a8   : > { %v504_v58 = vsub.f32 1.0, %v472_v54  ;;  %v790_v19 = vmul.f32 0.87758255, %v2624_v27  ;;  %v1337_v22 = vadd.f32 -0.23971277, %v2624_v27  ;;  %v965_v52 = vsel %vm901_vm5, %v869_v28, %v1352_v32 }
 0x1a9   : > { %v806_v0 = vmul.f32 0.87758255, %v2641_v12  ;;  %v1619_v6 = vpop.eup %1618  ;;  %1162 = vst [vmem:[%s2230_s27 + $0x50] sm:$0xff] %v1130_v51  ;;  %vm634_vm8 = vcmp.eq.f32.partialorder %v2679_v24, inf  ;;  %vm886_vm9 = vcmp.gt.f32.partialorder %v2624_v27, -0.87758255  ;;  %v1114_v62 = vsel %vm1082_vm3, %v965_v52, %v2574_v56 }
 0x1aa   : > { %1176 = vst [vmem:[%s2230_s27 + $0xc0] sm:$0xff] %v1144_v57  ;;  %1177 = vst [vmem:[%s2230_s27 + $0xc8] sm:$0xff] %v1145_v45  ;;  %v2764_v1 = vmax.f32 %v504_v58, 0.0  ;;  %v488_v47 = vmul.f32 %v2746_v21, %v2746_v21  ;;  %v1621_v10 = vpop.eup %1620  ;;  %vm1067_vm10 = vcmp.eq.s32.totalorder %v2094_v48, %v2317_v20  ;;  %v633_v38 = vmul.f32 %v1619_v6, %v2679_v24 }
 0x1ab   : > { %vm636_vm11 = vcmp.eq.f32.partialorder %v2679_v24, 0.0  ;;  %v1146_v50 = vmul.f32 64.0, %v1114_v62  ;;  %v473_v56 = vmul.f32 %v2748_v61, %v2748_v61  ;;  %v637_v15 = vand.u32 2147483648, %v2679_v24 }
 0x1ac   : > { %v745_v36 = vmul.f32 %v1621_v10, %v2685_v9  ;;  %vm746_vm12 = vcmp.eq.f32.partialorder %v2685_v9, inf  ;;  %vm1083_vm13 = vcmp.eq.s32.totalorder %v2094_v48, %v2709_v2  ;;  %1626 = vrsqrt.f32 %v2764_v1 }
 0x1ad   : > { %v635_v60 = vsel %vm634_vm8, %v2679_v24, %v633_v38  ;;  %v749_v37 = vand.u32 2147483648, %v2685_v9  ;;  %1178 = vst [vmem:[%s2230_s27 + $0xd0] sm:$0xff] %v1146_v50  ;;  %v520_v16 = vsub.f32 1.0, %v488_v47  ;;  %v505_v4 = vsub.f32 1.0, %v473_v56  ;;  %v2844_v47 = vpop.f32.mrf.mxu0  ;;  %v2850_v50 = vpop.f32.mrf.mxu1 }
 0x1ae   : > { %v638_v33 = vsel %vm636_vm11, %v637_v15, %v635_v60  ;;  %v747_v44 = vsel %vm746_vm12, %v2685_v9, %v745_v36  ;;  %vm748_vm14 = vcmp.eq.f32.partialorder %v2685_v9, 0.0  ;;  %v1353_v63 = vadd.f32 -0.23971277, %v2641_v12  ;;  %v1052_v60 = vpop.permute.xlu0 %1051 }
 0x1af   : > { %v1623_v26 = vpop.eup %1622  ;;  %v822_v41 = vmul.f32 0.47942555, %v638_v33  ;;  %v750_v11 = vsel %vm748_vm14, %v749_v37, %v747_v44  ;;  %v2790_v7 = vmax.f32 %v520_v16, 0.0  ;;  %v2792_v24 = vmax.f32 %v505_v4, 0.0 }
 0x1b0   : > { %vm1068_vm15 = vcmp.eq.s32.totalorder %v2080_v40, %v2375_v17  ;;  %v838_v13 = vmul.f32 0.47942555, %v750_v11  ;;  %v640_v23 = vmul.f32 %v1623_v26, %v2705_v59  ;;  %v791_v46 = vmul.f32 0.87758255, %v2654_v3 }
 0x1b1   : > { %v489_v9 = vmul.f32 %v2785_v30, %v2785_v30  ;;  %v854_v18 = vsub.f32 %v790_v19, %v822_v41  ;;  %vm641_vm0 = vcmp.eq.f32.partialorder %v2705_v59, inf  ;;  %v644_v32 = vand.u32 2147483648, %v2705_v59 }
 0x1b2   : > { %1628 = vrsqrt.f32 %v2790_v7  ;;  %v870_v55 = vsub.f32 %v806_v0, %v838_v13  ;;  %v642_v35 = vsel %vm641_vm0, %v2705_v59, %v640_v23  ;;  %vm643_vm1 = vcmp.eq.f32.partialorder %v2705_v59, 0.0 }
 0x1b3   : > { %1630 = vrsqrt.f32 %v2792_v24  ;;  %v950_v25 = vsel %vm886_vm9, %v854_v18, %v1337_v22  ;;  %v645_v42 = vsel %vm643_vm1, %v644_v32, %v642_v35  ;;  %vm902_vm2 = vcmp.gt.f32.partialorder %v2641_v12, -0.87758255 }
 0x1b4   : > { %v521_v31 = vsub.f32 1.0, %v489_v9  ;;  %v1625_v39 = vpop.eup %1624  ;;  %v1099_v5 = vsel %vm1067_vm10, %v950_v25, %v2624_v27  ;;  %v823_v14 = vmul.f32 0.47942555, %v645_v42  ;;  %vm887_vm3 = vcmp.gt.f32.partialorder %v2654_v3, -0.87758255 }
 0x1b5   : > { %v966_v59 = vsel %vm902_vm2, %v870_v55, %v1353_v63  ;;  %v1131_v54 = vmul.f32 64.0, %v1099_v5  ;;  %v1338_v43 = vadd.f32 -0.23971277, %v2654_v3  ;;  %v807_v57 = vmul.f32 0.87758255, %v2689_v8 }
 0x1b6   : > { %v1115_v28 = vsel %vm1083_vm13, %v966_v59, %v2641_v12  ;;  %v2819_v29 = vmax.f32 %v521_v31, 0.0  ;;  %v855_v51 = vsub.f32 %v791_v46, %v823_v14  ;;  %v752_v27 = vmul.f32 %v1625_v39, %v2726_v53 }
 0x1b7   : > { %v1147_v20 = vmul.f32 64.0, %v1115_v28  ;;  %1163 = vst [vmem:[%s2230_s27 + $0x58] sm:$0xff] %v1131_v54  ;;  %v1354_v45 = vadd.f32 -0.23971277, %v2689_v8  ;;  %v792_v58 = vmul.f32 0.87758255, %v2722_v49  ;;  %vm1069_vm7 = vcmp.eq.s32.totalorder %v2094_v48, %v2375_v17 }
 0x1b8   : > { %1632 = vrsqrt.f32 %v2819_v29  ;;  %vm753_vm6 = vcmp.eq.f32.partialorder %v2726_v53, inf  ;;  %v951_v19 = vsel %vm887_vm3, %v855_v51, %v1338_v43  ;;  %v1339_v12 = vadd.f32 -0.23971277, %v2722_v49 }
 0x1b9   : > { %1179 = vst [vmem:[%s2230_s27 + $0xd8] sm:$0xff] %v1147_v20  ;;  %v754_v2 = vsel %vm753_vm6, %v2726_v53, %v752_v27  ;;  %v756_v22 = vand.u32 2147483648, %v2726_v53  ;;  %v1627_v0 = vpop.eup %1626  ;;  %v1100_v52 = vsel %vm1068_vm15, %v951_v19, %v2654_v3  ;;  %vm888_vm5 = vcmp.gt.f32.partialorder %v2722_v49, -0.87758255 }
 0x1ba   : > { %v2838_v6 = vmul.f32 0.87758255, %v2746_v21  ;;  %v2841_v62 = vadd.f32 -0.23971277, %v2746_v21  ;;  %vm755_vm4 = vcmp.eq.f32.partialorder %v2726_v53, 0.0  ;;  %v1132_v10 = vmul.f32 64.0, %v1100_v52 }
 0x1bb   : > { %v647_v38 = vmul.f32 %v1627_v0, %v2764_v1  ;;  %vm648_vm8 = vcmp.eq.f32.partialorder %v2764_v1, inf  ;;  %v757_v3 = vsel %vm755_vm4, %v756_v22, %v754_v2  ;;  %vm650_vm9 = vcmp.eq.f32.partialorder %v2764_v1, 0.0  ;;  %v1055_v0 = vpop.permute.xlu1 %1054 }
 0x1bc   : > { %v651_v56 = vand.u32 2147483648, %v2764_v1  ;;  %vm655_vm10 = vcmp.eq.f32.partialorder %v2792_v24, inf  ;;  %v839_v53 = vmul.f32 0.47942555, %v757_v3  ;;  %1164 = vst [vmem:[%s2230_s27 + $0x60] sm:$0xff] %v1132_v10  ;;  %vm657_vm11 = vcmp.eq.f32.partialorder %v2792_v24, 0.0 }
 0x1bd   : > { %v649_v15 = vsel %vm648_vm8, %v2764_v1, %v647_v38  ;;  %v658_v36 = vand.u32 2147483648, %v2792_v24  ;;  %v474_v37 = vmul.f32 %v2844_v47, %v2844_v47  ;;  %vm760_vm12 = vcmp.eq.f32.partialorder %v2790_v7, inf }
 0x1be   : > { %v652_v16 = vsel %vm650_vm9, %v651_v56, %v649_v15  ;;  %v871_v4 = vsub.f32 %v807_v57, %v839_v53  ;;  %v490_v33 = vmul.f32 %v2850_v50, %v2850_v50  ;;  %v763_v26 = vand.u32 2147483648, %v2790_v7 }
 0x1bf   : > { %v1629_v44 = vpop.eup %1628  ;;  %v824_v63 = vmul.f32 0.47942555, %v652_v16  ;;  %vm903_vm13 = vcmp.gt.f32.partialorder %v2689_v8, -0.87758255  ;;  %v506_v1 = vsub.f32 1.0, %v474_v37  ;;  %vm1084_vm14 = vcmp.eq.s32.totalorder %v2080_v40, %v1052_v60 }
 0x1c0   : > { %v1631_v41 = vpop.eup %1630  ;;  %v759_v11 = vmul.f32 %v1629_v44, %v2790_v7  ;;  %v967_v13 = vsel %vm903_vm13, %v871_v4, %v1354_v45  ;;  %v522_v23 = vsub.f32 1.0, %v490_v33  ;;  %vm762_vm15 = vcmp.eq.f32.partialorder %v2790_v7, 0.0 }
 0x1c1   : > { %v856_v46 = vsub.f32 %v792_v58, %v824_v63  ;;  %v654_v9 = vmul.f32 %v1631_v41, %v2792_v24  ;;  %v1116_v18 = vsel %vm1084_vm14, %v967_v13, %v2689_v8  ;;  %v538_v32 = vmax.f32 %v506_v1, 0.0 }
 0x1c2   : > { %v761_v55 = vsel %vm760_vm12, %v2790_v7, %v759_v11  ;;  %v1148_v35 = vmul.f32 64.0, %v1116_v18  ;;  %v2874_v25 = vmax.f32 %v522_v23, 0.0  ;;  %v793_v5 = vmul.f32 0.87758255, %v2748_v61 }
 0x1c3   : > { %v952_v42 = vsel %vm888_vm5, %v856_v46, %v1339_v12  ;;  %v656_v31 = vsel %vm655_vm10, %v2792_v24, %v654_v9  ;;  %v764_v39 = vsel %vm762_vm15, %v763_v26, %v761_v55  ;;  %1634 = vrsqrt.f32 %v538_v32 }
 0x1c4   : > { %v1101_v8 = vsel %vm1069_vm7, %v952_v42, %v2722_v49  ;;  %v659_v7 = vsel %vm657_vm11, %v658_v36, %v656_v31  ;;  %v840_v14 = vmul.f32 0.47942555, %v764_v39  ;;  %1180 = vst [vmem:[%s2230_s27 + $0xe0] sm:$0xff] %v1148_v35  ;;  %vm889_vm0 = vcmp.gt.f32.partialorder %v2748_v61, -0.87758255 }
 0x1c5   : > { %v1633_v59 = vpop.eup %1632  ;;  %v1133_v54 = vmul.f32 64.0, %v1101_v8  ;;  %v825_v43 = vmul.f32 0.47942555, %v659_v7  ;;  %v1340_v28 = vadd.f32 -0.23971277, %v2748_v61  ;;  %1636 = vrsqrt.f32 %v2874_v25 }
 0x1c6   : > { %v766_v51 = vmul.f32 %v1633_v59, %v2819_v29  ;;  %v872_v57 = vsub.f32 %v2838_v6, %v840_v14  ;;  %vm767_vm1 = vcmp.eq.f32.partialorder %v2819_v29, inf  ;;  %v770_v49 = vand.u32 2147483648, %v2819_v29 }
 0x1c7   : > { %1165 = vst [vmem:[%s2230_s27 + $0x68] sm:$0xff] %v1133_v54  ;;  %v857_v17 = vsub.f32 %v793_v5, %v825_v43  ;;  %vm904_vm2 = vcmp.gt.f32.partialorder %v2746_v21, -0.87758255  ;;  %vm769_vm3 = vcmp.eq.f32.partialorder %v2819_v29, 0.0  ;;  %vm1085_vm6 = vcmp.eq.s32.totalorder %v2094_v48, %v1052_v60 }
 0x1c8   : > { %v768_v24 = vsel %vm767_vm1, %v2819_v29, %v766_v51  ;;  %v968_v20 = vsel %vm904_vm2, %v872_v57, %v2841_v62  ;;  %vm1070_vm5 = vcmp.eq.s32.totalorder %v2080_v40, %v2364_v34  ;;  %v809_v12 = vmul.f32 0.87758255, %v2785_v30 }
 0x1c9   : > { %v953_v27 = vsel %vm889_vm0, %v857_v17, %v1340_v28  ;;  %v771_v45 = vsel %vm769_vm3, %v770_v49, %v768_v24  ;;  %v1117_v58 = vsel %vm1085_vm6, %v968_v20, %v2746_v21  ;;  %v1356_v52 = vadd.f32 -0.23971277, %v2785_v30 }
 0x1ca   : > { %v1102_v19 = vsel %vm1070_vm5, %v953_v27, %v2748_v61  ;;  %v841_v2 = vmul.f32 0.47942555, %v771_v45  ;;  %v1149_v22 = vmul.f32 64.0, %v1117_v58  ;;  %vm905_vm4 = vcmp.gt.f32.partialorder %v2785_v30, -0.87758255 }
 0x1cb   : > { %v1134_v29 = vmul.f32 64.0, %v1102_v19  ;;  %vm1086_vm7 = vcmp.eq.s32.totalorder %v2080_v40, %v1055_v0  ;;  %vm662_vm8 = vcmp.eq.f32.partialorder %v538_v32, inf  ;;  %v665_v3 = vand.u32 2147483648, %v538_v32 }
 0x1cc   : > { %v873_v6 = vsub.f32 %v809_v12, %v841_v2  ;;  %1181 = vst [vmem:[%s2230_s27 + $0xe8] sm:$0xff] %v1149_v22  ;;  %vm664_vm9 = vcmp.eq.f32.partialorder %v538_v32, 0.0  ;;  %v794_v60 = vmul.f32 0.87758255, %v2844_v47  ;;  %vm774_vm10 = vcmp.eq.f32.partialorder %v2874_v25, inf }
 0x1cd   : > { %1166 = vst [vmem:[%s2230_s27 + $0x70] sm:$0xff] %v1134_v29  ;;  %v777_v40 = vand.u32 2147483648, %v2874_v25  ;;  %vm776_vm11 = vcmp.eq.f32.partialorder %v2874_v25, 0.0  ;;  %v1341_v4 = vadd.f32 -0.23971277, %v2844_v47  ;;  %vm1071_vm13 = vcmp.eq.s32.totalorder %v2094_v48, %v2364_v34 }
 0x1ce   : > { %v969_v62 = vsel %vm905_vm4, %v873_v6, %v1356_v52  ;;  %vm890_vm12 = vcmp.gt.f32.partialorder %v2844_v47, -0.87758255  ;;  %v810_v44 = vmul.f32 0.87758255, %v2850_v50  ;;  %v1357_v11 = vadd.f32 -0.23971277, %v2850_v50 }
 0x1cf   : > { %v1118_v21 = vsel %vm1086_vm7, %v969_v62, %v2785_v30  ;;  %vm906_vm14 = vcmp.gt.f32.partialorder %v2850_v50, -0.87758255  ;;  %vm1087_vm15 = vcmp.eq.s32.totalorder %v2094_v48, %v1055_v0 }
 0x1d0   : > { %v1635_v61 = vpop.eup %1634  ;;  %v1150_v10 = vmul.f32 64.0, %v1118_v21 }
 0x1d1   : > { %v661_v38 = vmul.f32 %v1635_v61, %v538_v32 }
 0x1d2   : > { %1182 = vst [vmem:[%s2230_s27 + $0xf0] sm:$0xff] %v1150_v10  ;;  %v1637_v56 = vpop.eup %1636 }
 0x1d3   : > { %v663_v53 = vsel %vm662_vm8, %v538_v32, %v661_v38  ;;  %v773_v36 = vmul.f32 %v1637_v56, %v2874_v25 }
 0x1d4   : > { %v666_v15 = vsel %vm664_vm9, %v665_v3, %v663_v53 }
 0x1d5   : > { %v826_v37 = vmul.f32 0.47942555, %v666_v15  ;;  %v775_v30 = vsel %vm774_vm10, %v2874_v25, %v773_v36 }
 0x1d6   : > { %v778_v33 = vsel %vm776_vm11, %v777_v40, %v775_v30 }
 0x1d7   : > { %v858_v16 = vsub.f32 %v794_v60, %v826_v37  ;;  %v842_v63 = vmul.f32 0.47942555, %v778_v33 }
 0x1d9   : > { %v954_v26 = vsel %vm890_vm12, %v858_v16, %v1341_v4  ;;  %v874_v41 = vsub.f32 %v810_v44, %v842_v63 }
 0x1da   : > { %v1103_v1 = vsel %vm1071_vm13, %v954_v26, %v2844_v47 }
 0x1db   : > { %v1135_v13 = vmul.f32 64.0, %v1103_v1  ;;  %v970_v23 = vsel %vm906_vm14, %v874_v41, %v1357_v11 }
 0x1dc   : > { %v1119_v34 = vsel %vm1087_vm15, %v970_v23, %v2850_v50 }
 0x1dd   : > { %1167 = vst [vmem:[%s2230_s27 + $0x78] sm:$0xff] %v1135_v13  ;;  %v1151_v47 = vmul.f32 64.0, %v1119_v34 }
 0x1df   : > { %1183 = vst [vmem:[%s2230_s27 + $0xf8] sm:$0xff] %v1151_v47 }
 0x1e0   : > { %1679 = shalt.err (!%p1676_p12)
}
 0x1e1   : > { %s1680_s11 = scalar_lea.hbm %s2935_s6, 4096  ;;  %s1684_s5 = scalar_lea.hbm %s3007_s3, 16384 }
 0x1e2   : > { %p1681_p0 = scmp.ne.s32.totalorder %s2935_s6, %s1680_s11  ;;  %p1685_p6 = scmp.lt.s32.totalorder %s2935_s6, %s3007_s3 }
 0x1e3   : > { %p1686_p4 = scmp.lt.s32.totalorder %s1684_s5, %s1680_s11 }
 0x1e4   : > { %p1682_p3 = pnand %p1681_p0, %p1906_p13 }
 0x1e5   : > { %p1687_p8 = por %p1686_p4, %p1685_p6 }
 0x1e6   : > { %p1683_p1 = pneg %p1682_p3 }
 0x1e8   : > { %p1688_p5 = pnand %p1687_p8, %p1683_p1 }
 0x1ea   : > { %1691 = shalt.err (!%p1688_p5)
}
 0x1eb   : > { %s1793_s18 = smov 256   ;;  %s1794_s4 = smov 512  }
 0x1ec   : > { %s1795_s23 = smov 16  }
 0x1ed   : > { %1466 = dma.vmem_to_hbm [thread:$0]  (%p1906_p13), %s2939_s19, 4096, %s2935_s6, %s2944_s7, %s1793_s18, %s1794_s4, %s1795_s23  }
 0x1ee PF: > { %p1477_p7 = scmp.ge.s32.totalorder %s1786_s22, 2  ;;  %s1216_s24 = sand.u32 1, %s1746_s12  }
 0x1ef   : > { %s1217_s28 = scalar_lea.sflag [#allocation4], %s1216_s24 }
 0x1f0   : > { %p1473_p9 = pnand %p1477_p7, %p1911_p2 }
 0x1f2   : > { %p1474_p10 = pneg %p1473_p9 }
 0x1f4   : > { %1741 = dma.done.wait (%p1474_p10), %s1217_s28, 4096  }
 0x1f5   : > { %1743 = vsyncadd (%p1474_p10), %s1217_s28, 4294963200  ;;  %s19_s22 = sadd.s32 1, %s1786_s22   ;;  %s3019_s19 = sld [smem:[#allocation8_spill]] }
 0x1f6   : > { %p16_p11 = scmp.ge.s32.totalorder %s19_s22, 6   ;;  %s3020_s9 = sld [smem:[#allocation9_spill]] }
 0x1f7   : > { %s3021_s21 = sld [smem:[#allocation10_spill]]  ;;  %s3022_s12 = smov %s1750_s13 }
 0x1f8   : > { %s3023_s13 = smov %s1754_s14  ;;  %s3024_s14 = smov %s1904_s8 }
 0x1f9   : > { %s3025_s15 = smov %s1762_s16  ;;  %s3026_s16 = smov %s1766_s17 }
 0x1fa   : > { %s3027_s17 = smov %s1890_s30  ;;  %s3028_s18 = smov %s1778_s20 }
 0x1fb   :  { %18 = sbr.rel (!%p16_p11) target bundleno = 9 (0x9), region = 83 }
 0x1fc   : > { %s3029_s20 = smov %s3020_s9 }
 0x200   :  { %1222 = vsyncpa [#allocation3], 1 }
 0x201   :  { %1224 = vsyncpa [#allocation3 + $0x1], 1 }
 0x202   :  { %1225 = vsyncpa [#allocation4], 1 }
 0x203   :  { %1227 = vsyncpa [#allocation4 + $0x1], 1 }

</bundles_post_ra>
